<compile_context>
chip_gen: v6e
topology: v6e:2x2x1
jax: 0.10.0
libtpu: 0.0.40
codegen_flags: <defaults>
</compile_context>

<pallas_src>
import functools

import jax
import jax.numpy as jnp
from jax.experimental import pallas as pl
from jax.experimental.pallas import tpu as pltpu

N_EMBD = 256
HIDDEN = 4 * N_EMBD
DROPOUT_P = 0.2


def _ffn_kernel(x_ref, w1_ref, b1_ref, w2_ref, b2_ref, o_ref, *,
                training: bool, drop_p: float, seed: int, hk: int):
    # x_ref: (tm, C) f32, w1_ref: (C, H) bf16, b1_ref: (1, H) f32,
    # w2_ref: (H, C) bf16, b2_ref: (1, C) f32, o_ref: (tm, C) bf16.
    tm, C = o_ref.shape
    H = w1_ref.shape[1]

    # Cast the row tile to bf16 on the VPU (free filler under the MXU).
    x_bf = x_ref[...].astype(jnp.bfloat16)

    # Chunk the hidden dim so only a (tm, hk) f32 intermediate is live at a
    # time; accumulate the second matmul in f32 (classic fused-FFN).
    y = jnp.zeros((tm, C), jnp.float32)
    for c in range(H // hk):
        lo = c * hk
        h = jnp.dot(x_bf, w1_ref[:, lo:lo + hk],
                    preferred_element_type=jnp.float32)
        h = jnp.maximum(h + b1_ref[:, lo:lo + hk], 0.0)          # ReLU (f32)
        y = y + jnp.dot(h.astype(jnp.bfloat16), w2_ref[lo:lo + hk, :],
                        preferred_element_type=jnp.float32)
    y = y + b2_ref[...]

    if training and drop_p > 0.0:
        if drop_p >= 1.0:
            y = jnp.zeros_like(y)
        else:
            # Counter-based hash PRNG keyed to the global element index, so
            # the mask is independent of tile size / padding and lowers on
            # both TPU Mosaic and the interpreter (pure int32/uint32 VPU ops).
            # TODO(synk): cannot bit-match torch.nn.Dropout's RNG stream;
            # semantics (i.i.d. Bernoulli keep, inverted scaling) are the same.
            rows = (jax.lax.broadcasted_iota(jnp.int32, (tm, C), 0)
                    + pl.program_id(0) * tm)
            cols = jax.lax.broadcasted_iota(jnp.int32, (tm, C), 1)
            k = (rows * C + cols).astype(jnp.uint32)
            k = k + jnp.uint32(seed & 0xFFFFFFFF) * jnp.uint32(0x9E3779B9)
            k = k ^ (k >> 16)
            k = k * jnp.uint32(0x7FEB352D)
            k = k ^ (k >> 15)
            k = k * jnp.uint32(0x846CA68B)
            k = k ^ (k >> 16)
            threshold = jnp.uint32(min(int(drop_p * (2 ** 32)), 2 ** 32 - 1))
            scale = jnp.float32(1.0 / (1.0 - drop_p))
            # compare + select + one multiply (no bool->f32 convert).
            y = jnp.where(k >= threshold, y * scale, 0.0)

    o_ref[...] = y.astype(o_ref.dtype)


def _row_tile_cap() -> int:
    # Default scoped-VMEM limits: v5e 16 MiB -> cap tm at 1024;
    # v6e / v7x 32 MiB -> 2048 fits comfortably with hidden chunking.
    try:
        kind = jax.devices()[0].device_kind.lower()
    except Exception:
        return 1024
    if "v5" in kind:
        return 1024
    if "v6" in kind or "v7" in kind or "7x" in kind:
        return 2048
    return 1024  # unknown / CPU interpret: conservative


def _choose_tm(m_rows: int, cap: int) -> int:
    # Big tiles amortize the ~0.35 us per-grid-step overhead; keep >= 2 tiles
    # when possible so a "parallel" grid can feed both v7x TensorCores.
    if m_rows <= 256:
        return max(8, -(-m_rows // 8) * 8)   # tiny M: one 8-aligned tile
    for tm in (2048, 1024, 512, 256):
        if tm <= cap and m_rows >= 2 * tm:
            return tm
    return 256


def feed_forward(x, w1, b1, w2, b2, *, training=False, drop_p=DROPOUT_P,
                 seed=0, out_dtype=jnp.bfloat16):
    """x: (B, T, C). Returns (B, T, C) in `out_dtype` (bf16 by default)."""
    B, T, C = x.shape
    H = w1.shape[1]
    assert C % 128 == 0 and H % 128 == 0, "n_embd / hidden must be multiples of 128"
    M = B * T

    tm = _choose_tm(M, _row_tile_cap())
    n_tiles = pl.cdiv(M, tm)
    m_pad = n_tiles * tm

    # x stays f32 into the kernel (cast happens in-body); pad only if ragged.
    x2d = x.reshape(M, C).astype(jnp.float32)
    if m_pad != M:
        x2d = jnp.pad(x2d, ((0, m_pad - M), (0, 0)))
    w1_bf = w1.astype(jnp.bfloat16)
    w2_bf = w2.astype(jnp.bfloat16)
    b1_2d = b1.reshape(1, H).astype(jnp.float32)
    b2_2d = b2.reshape(1, C).astype(jnp.float32)

    hk = 256 if H % 256 == 0 else H          # hidden chunk width

    kernel = functools.partial(_ffn_kernel, training=training,
                               drop_p=drop_p, seed=seed, hk=hk)

    out_bytes = 2 if out_dtype == jnp.bfloat16 else 4
    flops = 4 * m_pad * C * H                # two matmuls, 2 flop / MAC
    bytes_accessed = (m_pad * C * (4 + out_bytes)
                      + (w1_bf.size + w2_bf.size) * 2
                      + (b1_2d.size + b2_2d.size) * 4)

    out2d = pl.pallas_call(
        kernel,
        out_shape=jax.ShapeDtypeStruct((m_pad, C), out_dtype),
        grid_spec=pltpu.PrefetchScalarGridSpec(
            num_scalar_prefetch=0,
            grid=(n_tiles,),
            in_specs=[
                pl.BlockSpec((tm, C), lambda i: (i, 0)),   # x row tile (f32)
                pl.BlockSpec((C, H), lambda i: (0, 0)),    # W1 bf16, resident
                pl.BlockSpec((1, H), lambda i: (0, 0)),    # b1 f32
                pl.BlockSpec((H, C), lambda i: (0, 0)),    # W2 bf16, resident
                pl.BlockSpec((1, C), lambda i: (0, 0)),    # b2 f32
            ],
            out_specs=pl.BlockSpec((tm, C), lambda i: (i, 0)),
        ),
        compiler_params=pltpu.CompilerParams(
            dimension_semantics=("parallel",)),            # megacore-shardable
        cost_estimate=pl.CostEstimate(
            flops=flops, transcendentals=0, bytes_accessed=bytes_accessed),
    )(x2d, w1_bf, b1_2d, w2_bf, b2_2d)

    if m_pad != M:
        out2d = out2d[:M]
    return out2d.reshape(B, T, C)


def init_params(key, n_embd=N_EMBD):
    """Deterministic init mimicking PyTorch nn.Linear (uniform +-1/sqrt(fan_in))."""
    h = 4 * n_embd
    k1, k2, k3, k4 = jax.random.split(key, 4)
    bound1 = 1.0 / jnp.sqrt(n_embd)
    bound2 = 1.0 / jnp.sqrt(h)
    # Stored as (in_features, out_features) so the kernel does x @ W + b.
    w1 = jax.random.uniform(k1, (n_embd, h), jnp.float32, -bound1, bound1)
    b1 = jax.random.uniform(k2, (h,), jnp.float32, -bound1, bound1)
    w2 = jax.random.uniform(k3, (h, n_embd), jnp.float32, -bound2, bound2)
    b2 = jax.random.uniform(k4, (n_embd,), jnp.float32, -bound2, bound2)
    return w1, b1, w2, b2


if __name__ == "__main__":
    key = jax.random.PRNGKey(0)
    k_param, k_x = jax.random.split(key)

    B, T = 2, 8  # small batch/seq; channel dim fixed by the module (n_embd=256)
    x = jax.random.normal(k_x, (B, T, N_EMBD), jnp.float32)
    w1, b1, w2, b2 = init_params(k_param)

    # Eval mode (dropout = identity), matching module.eval() semantics.
    out_eval = jax.block_until_ready(
        feed_forward(x, w1, b1, w2, b2, training=False))

    # f32 reference; kernel uses bf16 matmul inputs + bf16 output with f32
    # accumulation, so compare with bf16-level tolerances.
    ref = jnp.maximum(x.reshape(-1, N_EMBD) @ w1 + b1, 0.0) @ w2 + b2
    ref = ref.reshape(B, T, N_EMBD)
    assert out_eval.shape == (B, T, N_EMBD)
    out_eval_f = out_eval.astype(jnp.float32)
    assert jnp.allclose(out_eval_f, ref, atol=5e-2, rtol=5e-2), \
        float(jnp.max(jnp.abs(out_eval_f - ref)))

    # Training mode: inverted dropout on top of the same forward.
    out_train = jax.block_until_ready(
        feed_forward(x, w1, b1, w2, b2, training=True, seed=1234))
    out_train_f = out_train.astype(jnp.float32)
    dropped = (out_train_f == 0.0)
    drop_frac = float(jnp.mean(dropped.astype(jnp.float32)))
    assert 0.08 < drop_frac < 0.35, drop_frac
    scale = 1.0 / (1.0 - DROPOUT_P)
    expect = jnp.where(dropped, 0.0, out_eval_f * scale)
    assert jnp.allclose(out_train_f, expect, atol=3e-2, rtol=3e-2), \
        float(jnp.max(jnp.abs(out_train_f - expect)))

    print("KERNEL_OK")
</pallas_src>

<mosaic_0001>
module attributes {stable_mosaic.version = 11 : i64} {
  func.func @_ffn_kernel(%arg0: i32, %arg1: memref<16x256xf32, #tpu.memory_space<vmem>>, %arg2: memref<256x1024xbf16, #tpu.memory_space<vmem>>, %arg3: memref<1x1024xf32, #tpu.memory_space<vmem>>, %arg4: memref<1024x256xbf16, #tpu.memory_space<vmem>>, %arg5: memref<1x256xf32, #tpu.memory_space<vmem>>, %arg6: memref<16x256xbf16, #tpu.memory_space<vmem>>) attributes {dimension_semantics = [#tpu.dimension_semantics<parallel>], iteration_bounds = array<i64: 1>, scalar_prefetch = 0 : i64, scratch_operands = 0 : i64, tpu.core_type = #tpu.core_type<tc>, window_params = [{transform_indices = @transform_0, window_bounds = array<i64: 16, 256>}, {pipeline_mode = #tpu.pipeline_mode<synchronous>, transform_indices = @transform_1, window_bounds = array<i64: 256, 1024>}, {pipeline_mode = #tpu.pipeline_mode<synchronous>, transform_indices = @transform_2, window_bounds = array<i64: 1, 1024>}, {pipeline_mode = #tpu.pipeline_mode<synchronous>, transform_indices = @transform_3, window_bounds = array<i64: 1024, 256>}, {pipeline_mode = #tpu.pipeline_mode<synchronous>, transform_indices = @transform_4, window_bounds = array<i64: 1, 256>}, {transform_indices = @transform_5, window_bounds = array<i64: 16, 256>}]} {
    %c0 = arith.constant 0 : index
    %c0_0 = arith.constant 0 : index
    %0 = vector.load %arg1[%c0, %c0_0] : memref<16x256xf32, #tpu.memory_space<vmem>>, vector<16x256xf32>
    %1 = arith.truncf %0 : vector<16x256xf32> to vector<16x256xbf16>
    %cst = arith.constant 0.000000e+00 : f32
    %2 = vector.broadcast %cst : f32 to vector<16x256xf32>
    %c0_1 = arith.constant 0 : index
    %c0_2 = arith.constant 0 : index
    %3 = vector.load %arg2[%c0_1, %c0_2] : memref<256x1024xbf16, #tpu.memory_space<vmem>>, vector<256x256xbf16>
    %cst_3 = arith.constant dense<0.000000e+00> : vector<16x256xf32>
    %4 = tpu.matmul %1, %3, %cst_3 {dimension_numbers = #tpu.dot_dimension_numbers<[1], [0], [0], [1], [0, 0, 1, 1], [], []>} : vector<16x256xbf16>, vector<256x256xbf16>, vector<16x256xf32> -> vector<16x256xf32>
    %c0_4 = arith.constant 0 : index
    %c0_5 = arith.constant 0 : index
    %5 = vector.load %arg3[%c0_4, %c0_5] : memref<1x1024xf32, #tpu.memory_space<vmem>>, vector<1x256xf32>
    %6 = vector.broadcast %5 : vector<1x256xf32> to vector<16x256xf32>
    %7 = arith.addf %4, %6 : vector<16x256xf32>
    %cst_6 = arith.constant 0.000000e+00 : f32
    %8 = vector.broadcast %cst_6 : f32 to vector<16x256xf32>
    %9 = arith.maximumf %7, %8 : vector<16x256xf32>
    %10 = arith.truncf %9 : vector<16x256xf32> to vector<16x256xbf16>
    %c0_7 = arith.constant 0 : index
    %c0_8 = arith.constant 0 : index
    %11 = vector.load %arg4[%c0_7, %c0_8] : memref<1024x256xbf16, #tpu.memory_space<vmem>>, vector<256x256xbf16>
    %cst_9 = arith.constant dense<0.000000e+00> : vector<16x256xf32>
    %12 = tpu.matmul %10, %11, %cst_9 {dimension_numbers = #tpu.dot_dimension_numbers<[1], [0], [0], [1], [0, 0, 1, 1], [], []>} : vector<16x256xbf16>, vector<256x256xbf16>, vector<16x256xf32> -> vector<16x256xf32>
    %13 = arith.addf %2, %12 : vector<16x256xf32>
    %c0_10 = arith.constant 0 : index
    %c256 = arith.constant 256 : index
    %14 = vector.load %arg2[%c0_10, %c256] : memref<256x1024xbf16, #tpu.memory_space<vmem>>, vector<256x256xbf16>
    %cst_11 = arith.constant dense<0.000000e+00> : vector<16x256xf32>
    %15 = tpu.matmul %1, %14, %cst_11 {dimension_numbers = #tpu.dot_dimension_numbers<[1], [0], [0], [1], [0, 0, 1, 1], [], []>} : vector<16x256xbf16>, vector<256x256xbf16>, vector<16x256xf32> -> vector<16x256xf32>
    %c0_12 = arith.constant 0 : index
    %c256_13 = arith.constant 256 : index
    %16 = vector.load %arg3[%c0_12, %c256_13] : memref<1x1024xf32, #tpu.memory_space<vmem>>, vector<1x256xf32>
    %17 = vector.broadcast %16 : vector<1x256xf32> to vector<16x256xf32>
    %18 = arith.addf %15, %17 : vector<16x256xf32>
    %cst_14 = arith.constant 0.000000e+00 : f32
    %19 = vector.broadcast %cst_14 : f32 to vector<16x256xf32>
    %20 = arith.maximumf %18, %19 : vector<16x256xf32>
    %21 = arith.truncf %20 : vector<16x256xf32> to vector<16x256xbf16>
    %c256_15 = arith.constant 256 : index
    %c0_16 = arith.constant 0 : index
    %22 = vector.load %arg4[%c256_15, %c0_16] : memref<1024x256xbf16, #tpu.memory_space<vmem>>, vector<256x256xbf16>
    %cst_17 = arith.constant dense<0.000000e+00> : vector<16x256xf32>
    %23 = tpu.matmul %21, %22, %cst_17 {dimension_numbers = #tpu.dot_dimension_numbers<[1], [0], [0], [1], [0, 0, 1, 1], [], []>} : vector<16x256xbf16>, vector<256x256xbf16>, vector<16x256xf32> -> vector<16x256xf32>
    %24 = arith.addf %13, %23 : vector<16x256xf32>
    %c0_18 = arith.constant 0 : index
    %c512 = arith.constant 512 : index
    %25 = vector.load %arg2[%c0_18, %c512] : memref<256x1024xbf16, #tpu.memory_space<vmem>>, vector<256x256xbf16>
    %cst_19 = arith.constant dense<0.000000e+00> : vector<16x256xf32>
    %26 = tpu.matmul %1, %25, %cst_19 {dimension_numbers = #tpu.dot_dimension_numbers<[1], [0], [0], [1], [0, 0, 1, 1], [], []>} : vector<16x256xbf16>, vector<256x256xbf16>, vector<16x256xf32> -> vector<16x256xf32>
    %c0_20 = arith.constant 0 : index
    %c512_21 = arith.constant 512 : index
    %27 = vector.load %arg3[%c0_20, %c512_21] : memref<1x1024xf32, #tpu.memory_space<vmem>>, vector<1x256xf32>
    %28 = vector.broadcast %27 : vector<1x256xf32> to vector<16x256xf32>
    %29 = arith.addf %26, %28 : vector<16x256xf32>
    %cst_22 = arith.constant 0.000000e+00 : f32
    %30 = vector.broadcast %cst_22 : f32 to vector<16x256xf32>
    %31 = arith.maximumf %29, %30 : vector<16x256xf32>
    %32 = arith.truncf %31 : vector<16x256xf32> to vector<16x256xbf16>
    %c512_23 = arith.constant 512 : index
    %c0_24 = arith.constant 0 : index
    %33 = vector.load %arg4[%c512_23, %c0_24] : memref<1024x256xbf16, #tpu.memory_space<vmem>>, vector<256x256xbf16>
    %cst_25 = arith.constant dense<0.000000e+00> : vector<16x256xf32>
    %34 = tpu.matmul %32, %33, %cst_25 {dimension_numbers = #tpu.dot_dimension_numbers<[1], [0], [0], [1], [0, 0, 1, 1], [], []>} : vector<16x256xbf16>, vector<256x256xbf16>, vector<16x256xf32> -> vector<16x256xf32>
    %35 = arith.addf %24, %34 : vector<16x256xf32>
    %c0_26 = arith.constant 0 : index
    %c768 = arith.constant 768 : index
    %36 = vector.load %arg2[%c0_26, %c768] : memref<256x1024xbf16, #tpu.memory_space<vmem>>, vector<256x256xbf16>
    %cst_27 = arith.constant dense<0.000000e+00> : vector<16x256xf32>
    %37 = tpu.matmul %1, %36, %cst_27 {dimension_numbers = #tpu.dot_dimension_numbers<[1], [0], [0], [1], [0, 0, 1, 1], [], []>} : vector<16x256xbf16>, vector<256x256xbf16>, vector<16x256xf32> -> vector<16x256xf32>
    %c0_28 = arith.constant 0 : index
    %c768_29 = arith.constant 768 : index
    %38 = vector.load %arg3[%c0_28, %c768_29] : memref<1x1024xf32, #tpu.memory_space<vmem>>, vector<1x256xf32>
    %39 = vector.broadcast %38 : vector<1x256xf32> to vector<16x256xf32>
    %40 = arith.addf %37, %39 : vector<16x256xf32>
    %cst_30 = arith.constant 0.000000e+00 : f32
    %41 = vector.broadcast %cst_30 : f32 to vector<16x256xf32>
    %42 = arith.maximumf %40, %41 : vector<16x256xf32>
    %43 = arith.truncf %42 : vector<16x256xf32> to vector<16x256xbf16>
    %c768_31 = arith.constant 768 : index
    %c0_32 = arith.constant 0 : index
    %44 = vector.load %arg4[%c768_31, %c0_32] : memref<1024x256xbf16, #tpu.memory_space<vmem>>, vector<256x256xbf16>
    %cst_33 = arith.constant dense<0.000000e+00> : vector<16x256xf32>
    %45 = tpu.matmul %43, %44, %cst_33 {dimension_numbers = #tpu.dot_dimension_numbers<[1], [0], [0], [1], [0, 0, 1, 1], [], []>} : vector<16x256xbf16>, vector<256x256xbf16>, vector<16x256xf32> -> vector<16x256xf32>
    %46 = arith.addf %35, %45 : vector<16x256xf32>
    %c0_34 = arith.constant 0 : index
    %c0_35 = arith.constant 0 : index
    %47 = vector.load %arg5[%c0_34, %c0_35] : memref<1x256xf32, #tpu.memory_space<vmem>>, vector<1x256xf32>
    %48 = vector.broadcast %47 : vector<1x256xf32> to vector<16x256xf32>
    %49 = arith.addf %46, %48 : vector<16x256xf32>
    %50 = arith.truncf %49 : vector<16x256xf32> to vector<16x256xbf16>
    %c0_36 = arith.constant 0 : index
    %c0_37 = arith.constant 0 : index
    %51 = vector.load %arg6[%c0_36, %c0_37] : memref<16x256xbf16, #tpu.memory_space<vmem>>, vector<16x256xbf16>
    tpu.vector_store %arg6[%c0_36, %c0_37], %50 {strides = array<i32>} : memref<16x256xbf16, #tpu.memory_space<vmem>>, vector<16x256xbf16>,
    return
  }
  func.func @transform_0(%arg0: i32) -> (i32, i32) {
    %c0_i32 = arith.constant 0 : i32
    %c0_i32_0 = arith.constant 0 : i32
    return %arg0, %c0_i32 : i32, i32
  }
  func.func @transform_1(%arg0: i32) -> (i32, i32) {
    %c0_i32 = arith.constant 0 : i32
    %c0_i32_0 = arith.constant 0 : i32
    %c0_i32_1 = arith.constant 0 : i32
    return %c0_i32, %c0_i32_0 : i32, i32
  }
  func.func @transform_2(%arg0: i32) -> (i32, i32) {
    %c0_i32 = arith.constant 0 : i32
    %c0_i32_0 = arith.constant 0 : i32
    %c0_i32_1 = arith.constant 0 : i32
    return %c0_i32, %c0_i32_0 : i32, i32
  }
  func.func @transform_3(%arg0: i32) -> (i32, i32) {
    %c0_i32 = arith.constant 0 : i32
    %c0_i32_0 = arith.constant 0 : i32
    %c0_i32_1 = arith.constant 0 : i32
    return %c0_i32, %c0_i32_0 : i32, i32
  }
  func.func @transform_4(%arg0: i32) -> (i32, i32) {
    %c0_i32 = arith.constant 0 : i32
    %c0_i32_0 = arith.constant 0 : i32
    %c0_i32_1 = arith.constant 0 : i32
    return %c0_i32, %c0_i32_0 : i32, i32
  }
  func.func @transform_5(%arg0: i32) -> (i32, i32) {
    %c0_i32 = arith.constant 0 : i32
    %c0_i32_0 = arith.constant 0 : i32
    return %arg0, %c0_i32 : i32, i32
  }
}

</mosaic_0001>

<bundles_post_ra>
// kernel: tpu_custom_call.1
= control target key start
LH: loop header
LB: loop body
LE: loop exit
PB: predicated region body
PF: predicated region fallthrough
CT: control target
= control target key end

     0   :  { %10 = vsyncpa [#allocation3], 0  ;;  %s2763_s0 = inlined_call_operand.hbm [shape: f32[16,256], index: 0, kind: input, shape index: {}]   ;;  %s2764_s1 = inlined_call_operand.hbm [shape: bf16[256,1024], index: 1, kind: input, shape index: {}]   ;;  %s2765_s2 = inlined_call_operand.hbm [shape: f32[1,1024], index: 2, kind: input, shape index: {}]   ;;  %s2766_s3 = inlined_call_operand.hbm [shape: bf16[1024,256], index: 3, kind: input, shape index: {}]   ;;  %s2767_s4 = inlined_call_operand.vmem [shape: f32[1,256], index: 4, kind: input, shape index: {}]   ;;  %s2768_s5 = inlined_call_operand.hbm [shape: bf16[16,256], index: 5, kind: output, shape index: {}]  }
   0x1   :  { %11 = vsyncpa [#allocation6], 0 }
   0x2   :  { %12 = vsyncpa [#allocation9], 0 }
   0x3   :  { %13 = vsyncpa [#allocation4], 0  ;;  %s2660_s18 = smov [#allocation5]  }
   0x4   :  { %s31_s19 = sshll.u32 %s2660_s18, 4  ;;  %s32_s19 = int_to_ptr.vmem [resolvable:$true] %s31_s19 }
   0x5   :  { %s2560_s20 = scalar_lea.vmem %s32_s19, 16384  ;;  %p2565_p1 = scmp.lt.s32.totalorder %s32_s19, %s32_s19 }
   0x6   :  { %p2561_p0 = scmp.ne.s32.totalorder %s32_s19, %s2560_s20  ;;  %p2566_p2 = scmp.lt.s32.totalorder %s2560_s20, %s2560_s20 }
   0x8   :  { %p2567_p3 = por %p2566_p2, %p2565_p1 }
   0xa   :  { %p2568_p4 = pnand %p2567_p3, %p2561_p0 }
   0xc   :  { %2571 = shalt.err (!%p2568_p4)
}
   0xd   :  { %s2661_s21 = smov 512   ;;  %s2662_s22 = smov 32  }
   0xe   :  { %37 = dma.hbm_to_vmem [thread:$0]  %s2764_s1, 16384, %s32_s19, [#allocation6], %s2661_s21, %s2661_s21, %s2662_s22  }
   0xf   :  { %s2663_s25 = smov [#allocation2]  }
  0x10   :  { %s19_s26 = sshll.u32 %s2663_s25, 4  ;;  %s20_s26 = int_to_ptr.vmem [resolvable:$true] %s19_s26 }
  0x11   :  { %s2580_s27 = scalar_lea.vmem %s20_s26, 512  ;;  %p2585_p6 = scmp.lt.s32.totalorder %s20_s26, %s20_s26 }
  0x12   :  { %p2581_p5 = scmp.ne.s32.totalorder %s20_s26, %s2580_s27  ;;  %p2586_p7 = scmp.lt.s32.totalorder %s2580_s27, %s2580_s27 }
  0x14   :  { %p2587_p8 = por %p2586_p7, %p2585_p6 }
  0x16   :  { %p2588_p9 = pnand %p2587_p8, %p2581_p5 }
  0x18   :  { %2591 = shalt.err (!%p2588_p9)
}
  0x19   :  { %s2664_s28 = smov 256   ;;  %s2665_s29 = smov 16  }
  0x1a   :  { %25 = dma.hbm_to_vmem [thread:$0]  %s2763_s0, 512, %s20_s26, [#allocation3], %s2664_s28, %s2664_s28, %s2665_s29  }
  0x1b   :  { %s2666_s7 = smov [#allocation7]   ;;  %s2667_s9 = smov [#allocation8]  }
  0x1c   :  { %s44_s8 = sshll.u32 %s2666_s7, 4  ;;  %s53_s1 = sshll.u32 %s2667_s9, 4  ;;  %s45_s8 = int_to_ptr.vmem [resolvable:$true] %s44_s8  ;;  %s54_s1 = int_to_ptr.vmem [resolvable:$true] %s53_s1 }
  0x1d   :  { %s2600_s10 = scalar_lea.vmem %s45_s8, 128  ;;  %p2605_p11 = scmp.lt.s32.totalorder %s45_s8, %s45_s8 }
  0x1e   :  { %p2601_p10 = scmp.ne.s32.totalorder %s45_s8, %s2600_s10  ;;  %p2606_p12 = scmp.lt.s32.totalorder %s2600_s10, %s2600_s10 }
  0x20   :  { %p2607_p13 = por %p2606_p12, %p2605_p11 }
  0x22   :  { %p2608_p0 = pnand %p2607_p13, %p2601_p10 }
  0x24   :  { %2611 = shalt.err (!%p2608_p0)
}
  0x25   :  { %47 = dma.hbm_to_vmem [thread:$0]  %s2765_s2, 128, %s45_s8, [#allocation6]  }
  0x26   :  { %s2620_s13 = scalar_lea.vmem %s54_s1, 16384  ;;  %p2625_p2 = scmp.lt.s32.totalorder %s54_s1, %s54_s1 }
  0x27   :  { %p2621_p1 = scmp.ne.s32.totalorder %s54_s1, %s2620_s13  ;;  %p2626_p3 = scmp.lt.s32.totalorder %s2620_s13, %s2620_s13 }
  0x29   :  { %p2627_p4 = por %p2626_p3, %p2625_p2 }
  0x2b   :  { %p2628_p5 = pnand %p2627_p4, %p2621_p1 }
  0x2d   :  { %2631 = shalt.err (!%p2628_p5)
}
  0x2e   :  { %s2668_s0 = smov 128   ;;  %s2669_s14 = smov 8  }
  0x2f   :  { %59 = dma.hbm_to_vmem [thread:$0]  %s2766_s3, 16384, %s54_s1, [#allocation9], %s2668_s0, %s2668_s0, %s2669_s14  }
  0x30   :  { %2652 = dma.done.wait [#allocation3], 512  }
  0x31   :  { %2653 = vsyncadd [#allocation3], 4294966784 }
  0x32   :  { %2654 = dma.done.wait [#allocation6], 16512  }
  0x33   :  { %2655 = vsyncadd [#allocation6], 4294950784 }
  0x34   :  { %2656 = dma.done.wait [#allocation9], 16384  }
  0x35   :  { %2657 = vsyncadd [#allocation9], 4294950912  ;;  %v94_v0 = vld [vmem:[#allocation5 + $0x1c0] sm:$0xff]  ;;  %v379_v2 = vld [vmem:[#allocation5 + $0x1c8] sm:$0xff] }
  0x36   :  { %v95_v1 = vld [vmem:[#allocation5 + $0x1e0] sm:$0xff]  ;;  %v380_v4 = vld [vmem:[#allocation5 + $0x1e8] sm:$0xff]  ;;  %v77_v54 = vld [vmem:[#allocation2 + $0x18] sm:$0xff] }
  0x37   :  { %v2104_v3 = vcombine.high %v94_v0, %v95_v1  ;;  %v2103_v5 = vcombine.low %v94_v0, %v95_v1  ;;  %v92_v6 = vld [vmem:[#allocation5 + $0x180] sm:$0xff]  ;;  %v2136_v8 = vcombine.high %v379_v2, %v380_v4  ;;  %v2135_v9 = vcombine.low %v379_v2, %v380_v4  ;;  %v377_v11 = vld [vmem:[#allocation5 + $0x188] sm:$0xff] }
  0x38   :  { %v93_v7 = vld [vmem:[#allocation5 + $0x1a0] sm:$0xff]  ;;  %v378_v12 = vld [vmem:[#allocation5 + $0x1a8] sm:$0xff] }
  0x39   :  { %v2102_v10 = vcombine.high %v92_v6, %v93_v7  ;;  %v90_v13 = vld [vmem:[#allocation5 + $0x140] sm:$0xff]  ;;  %284 = vmatprep.subr.bf16.mxu0 %v2104_v3  ;;  %v2134_v14 = vcombine.high %v377_v11, %v378_v12  ;;  %v375_v16 = vld [vmem:[#allocation5 + $0x148] sm:$0xff]  ;;  %569 = vmatprep.subr.bf16.mxu1 %v2136_v8  ;;  %v2101_v18 = vcombine.low %v92_v6, %v93_v7 }
  0x3a   :  { %v91_v15 = vld [vmem:[#allocation5 + $0x160] sm:$0xff]  ;;  %v376_v17 = vld [vmem:[#allocation5 + $0x168] sm:$0xff]  ;;  %285 = vmatpush1.bf16.msra.mxu0 %v2103_v5  ;;  %570 = vmatpush1.bf16.msra.mxu1 %v2135_v9  ;;  %v2133_v19 = vcombine.low %v377_v11, %v378_v12 }
  0x3b   :  { %286 = vmatprep.subr.bf16.mxu0 %v2102_v10  ;;  %v2100_v20 = vcombine.high %v90_v13, %v91_v15  ;;  %571 = vmatprep.subr.bf16.mxu1 %v2134_v14  ;;  %v2132_v21 = vcombine.high %v375_v16, %v376_v17  ;;  %v88_v22 = vld [vmem:[#allocation5 + $0x100] sm:$0xff]  ;;  %v373_v24 = vld [vmem:[#allocation5 + $0x108] sm:$0xff]  ;;  %v2099_v26 = vcombine.low %v90_v13, %v91_v15 }
  0x3c   :  { %v89_v23 = vld [vmem:[#allocation5 + $0x120] sm:$0xff]  ;;  %v374_v25 = vld [vmem:[#allocation5 + $0x128] sm:$0xff]  ;;  %v2131_v27 = vcombine.low %v375_v16, %v376_v17 }
  0x3d   :  { %v2098_v28 = vcombine.high %v88_v22, %v89_v23  ;;  %v2130_v29 = vcombine.high %v373_v24, %v374_v25  ;;  %v86_v30 = vld [vmem:[#allocation5 + $0xc0] sm:$0xff]  ;;  %v371_v32 = vld [vmem:[#allocation5 + $0xc8] sm:$0xff]  ;;  %v2097_v34 = vcombine.low %v88_v22, %v89_v23  ;;  %v2129_v35 = vcombine.low %v373_v24, %v374_v25 }
  0x3e   :  { %287 = vmatpush1.bf16.msra.mxu0 %v2101_v18  ;;  %572 = vmatpush1.bf16.msra.mxu1 %v2133_v19  ;;  %v87_v31 = vld [vmem:[#allocation5 + $0xe0] sm:$0xff]  ;;  %v372_v33 = vld [vmem:[#allocation5 + $0xe8] sm:$0xff] }
  0x3f   :  { %288 = vmatprep.subr.bf16.mxu0 %v2100_v20  ;;  %573 = vmatprep.subr.bf16.mxu1 %v2132_v21  ;;  %v2096_v36 = vcombine.high %v86_v30, %v87_v31  ;;  %v2128_v37 = vcombine.high %v371_v32, %v372_v33  ;;  %v84_v38 = vld [vmem:[#allocation5 + $0x80] sm:$0xff]  ;;  %v369_v40 = vld [vmem:[#allocation5 + $0x88] sm:$0xff]  ;;  %v2095_v42 = vcombine.low %v86_v30, %v87_v31 }
  0x40   :  { %v85_v39 = vld [vmem:[#allocation5 + $0xa0] sm:$0xff]  ;;  %v370_v41 = vld [vmem:[#allocation5 + $0xa8] sm:$0xff]  ;;  %v2127_v43 = vcombine.low %v371_v32, %v372_v33 }
  0x41   :  { %v2094_v44 = vcombine.high %v84_v38, %v85_v39  ;;  %v2126_v45 = vcombine.high %v369_v40, %v370_v41  ;;  %v82_v46 = vld [vmem:[#allocation5 + $0x40] sm:$0xff]  ;;  %v367_v48 = vld [vmem:[#allocation5 + $0x48] sm:$0xff]  ;;  %v2093_v50 = vcombine.low %v84_v38, %v85_v39  ;;  %v2125_v51 = vcombine.low %v369_v40, %v370_v41 }
  0x42   :  { %289 = vmatpush1.bf16.msra.mxu0 %v2099_v26  ;;  %574 = vmatpush1.bf16.msra.mxu1 %v2131_v27  ;;  %v83_v47 = vld [vmem:[#allocation5 + $0x60] sm:$0xff]  ;;  %v368_v49 = vld [vmem:[#allocation5 + $0x68] sm:$0xff] }
  0x43   :  { %290 = vmatprep.subr.bf16.mxu0 %v2098_v28  ;;  %575 = vmatprep.subr.bf16.mxu1 %v2130_v29  ;;  %v2092_v52 = vcombine.high %v82_v46, %v83_v47  ;;  %v75_v53 = vld [vmem:[#allocation2 + $0x8] sm:$0xff]  ;;  %v2124_v55 = vcombine.high %v367_v48, %v368_v49  ;;  %v80_v56 = vld [vmem:[#allocation5] sm:$0xff]  ;;  %v2091_v61 = vcombine.low %v82_v46, %v83_v47 }
  0x44   :  { %v81_v57 = vld [vmem:[#allocation5 + $0x20] sm:$0xff]  ;;  %v2716_v58 = vpack.c.bf16 %v77_v54, %v75_v53  ;;  %v365_v59 = vld [vmem:[#allocation5 + $0x8] sm:$0xff]  ;;  %v2123_v62 = vcombine.low %v367_v48, %v368_v49 }
  0x45   :  { %v366_v60 = vld [vmem:[#allocation5 + $0x28] sm:$0xff]  ;;  %v2090_v63 = vcombine.high %v80_v56, %v81_v57  ;;  %v110_v1 = vld [vmem:[#allocation5 + $0x3c0] sm:$0xff]  ;;  %v2089_v5 = vcombine.low %v80_v56, %v81_v57 }
  0x46   :  { %291 = vmatpush1.bf16.msra.mxu0 %v2097_v34  ;;  %576 = vmatpush1.bf16.msra.mxu1 %v2129_v35  ;;  %v2122_v0 = vcombine.high %v365_v59, %v366_v60  ;;  %v111_v2 = vld [vmem:[#allocation5 + $0x3e0] sm:$0xff]  ;;  %v395_v3 = vld [vmem:[#allocation5 + $0x3c8] sm:$0xff]  ;;  %v2121_v6 = vcombine.low %v365_v59, %v366_v60 }
  0x47   :  { %292 = vmatprep.subr.bf16.mxu0 %v2096_v36  ;;  %577 = vmatprep.subr.bf16.mxu1 %v2128_v37  ;;  %v396_v4 = vld [vmem:[#allocation5 + $0x3e8] sm:$0xff]  ;;  %v2120_v7 = vcombine.high %v110_v1, %v111_v2  ;;  %v108_v9 = vld [vmem:[#allocation5 + $0x380] sm:$0xff]  ;;  %v2119_v13 = vcombine.low %v110_v1, %v111_v2 }
  0x48   :  { %316 = vmatprep.mubr.bf16.mxu0 %v2716_v58  ;;  %601 = vmatprep.mubr.bf16.mxu1 %v2716_v58  ;;  %v2152_v8 = vcombine.high %v395_v3, %v396_v4  ;;  %v109_v10 = vld [vmem:[#allocation5 + $0x3a0] sm:$0xff]  ;;  %v393_v11 = vld [vmem:[#allocation5 + $0x388] sm:$0xff]  ;;  %v2151_v14 = vcombine.low %v395_v3, %v396_v4  ;;  %v76_v3 = vld [vmem:[#allocation2 + $0x10] sm:$0xff] }
  0x49   :  { %v394_v12 = vld [vmem:[#allocation5 + $0x3a8] sm:$0xff]  ;;  %v2118_v15 = vcombine.high %v108_v9, %v109_v10  ;;  %v106_v17 = vld [vmem:[#allocation5 + $0x340] sm:$0xff]  ;;  %v2117_v21 = vcombine.low %v108_v9, %v109_v10 }
  0x4a   :  { %293 = vmatpush1.bf16.msra.mxu0 %v2095_v42  ;;  %578 = vmatpush1.bf16.msra.mxu1 %v2127_v43  ;;  %v2150_v16 = vcombine.high %v393_v11, %v394_v12  ;;  %v107_v18 = vld [vmem:[#allocation5 + $0x360] sm:$0xff]  ;;  %v391_v19 = vld [vmem:[#allocation5 + $0x348] sm:$0xff]  ;;  %v2149_v22 = vcombine.low %v393_v11, %v394_v12 }
  0x4b   :  { %294 = vmatprep.subr.bf16.mxu0 %v2094_v44  ;;  %579 = vmatprep.subr.bf16.mxu1 %v2126_v45  ;;  %v392_v20 = vld [vmem:[#allocation5 + $0x368] sm:$0xff]  ;;  %v2116_v23 = vcombine.high %v106_v17, %v107_v18  ;;  %v104_v25 = vld [vmem:[#allocation5 + $0x300] sm:$0xff]  ;;  %v2115_v29 = vcombine.low %v106_v17, %v107_v18 }
  0x4c   :  { %v2148_v24 = vcombine.high %v391_v19, %v392_v20  ;;  %v105_v26 = vld [vmem:[#allocation5 + $0x320] sm:$0xff]  ;;  %v389_v27 = vld [vmem:[#allocation5 + $0x308] sm:$0xff]  ;;  %v2147_v30 = vcombine.low %v391_v19, %v392_v20 }
  0x4d   :  { %v390_v28 = vld [vmem:[#allocation5 + $0x328] sm:$0xff]  ;;  %v2114_v31 = vcombine.high %v104_v25, %v105_v26  ;;  %v102_v33 = vld [vmem:[#allocation5 + $0x2c0] sm:$0xff]  ;;  %v2113_v37 = vcombine.low %v104_v25, %v105_v26 }
  0x4e   :  { %295 = vmatpush1.bf16.msra.mxu0 %v2093_v50  ;;  %580 = vmatpush1.bf16.msra.mxu1 %v2125_v51  ;;  %v2146_v32 = vcombine.high %v389_v27, %v390_v28  ;;  %v103_v34 = vld [vmem:[#allocation5 + $0x2e0] sm:$0xff]  ;;  %v387_v35 = vld [vmem:[#allocation5 + $0x2c8] sm:$0xff]  ;;  %v2145_v38 = vcombine.low %v389_v27, %v390_v28 }
  0x4f   :  { %296 = vmatprep.subr.bf16.mxu0 %v2092_v52  ;;  %581 = vmatprep.subr.bf16.mxu1 %v2124_v55  ;;  %v388_v36 = vld [vmem:[#allocation5 + $0x2e8] sm:$0xff]  ;;  %v2112_v39 = vcombine.high %v102_v33, %v103_v34  ;;  %v100_v41 = vld [vmem:[#allocation5 + $0x280] sm:$0xff]  ;;  %v2111_v45 = vcombine.low %v102_v33, %v103_v34 }
  0x50   :  { %v2144_v40 = vcombine.high %v387_v35, %v388_v36  ;;  %v101_v42 = vld [vmem:[#allocation5 + $0x2a0] sm:$0xff]  ;;  %v385_v43 = vld [vmem:[#allocation5 + $0x288] sm:$0xff]  ;;  %v2143_v46 = vcombine.low %v387_v35, %v388_v36 }
  0x51   :  { %v386_v44 = vld [vmem:[#allocation5 + $0x2a8] sm:$0xff]  ;;  %v2110_v47 = vcombine.high %v100_v41, %v101_v42  ;;  %v98_v49 = vld [vmem:[#allocation5 + $0x240] sm:$0xff]  ;;  %v2109_v53 = vcombine.low %v100_v41, %v101_v42 }
  0x52   :  { %297 = vmatpush1.bf16.msra.mxu0 %v2091_v61  ;;  %582 = vmatpush1.bf16.msra.mxu1 %v2123_v62  ;;  %v2142_v48 = vcombine.high %v385_v43, %v386_v44  ;;  %v99_v50 = vld [vmem:[#allocation5 + $0x260] sm:$0xff]  ;;  %v383_v51 = vld [vmem:[#allocation5 + $0x248] sm:$0xff]  ;;  %v2141_v54 = vcombine.low %v385_v43, %v386_v44 }
  0x53   :  { %298 = vmatprep.subr.bf16.mxu0 %v2090_v63  ;;  %583 = vmatprep.subr.bf16.mxu1 %v2122_v0  ;;  %v384_v52 = vld [vmem:[#allocation5 + $0x268] sm:$0xff]  ;;  %v2108_v55 = vcombine.high %v98_v49, %v99_v50  ;;  %v96_v57 = vld [vmem:[#allocation5 + $0x200] sm:$0xff]  ;;  %v2107_v62 = vcombine.low %v98_v49, %v99_v50 }
  0x54   :  { %v2140_v56 = vcombine.high %v383_v51, %v384_v52  ;;  %v97_v59 = vld [vmem:[#allocation5 + $0x220] sm:$0xff]  ;;  %v381_v60 = vld [vmem:[#allocation5 + $0x208] sm:$0xff]  ;;  %v2139_v63 = vcombine.low %v383_v51, %v384_v52 }
  0x55   :  { %v382_v61 = vld [vmem:[#allocation5 + $0x228] sm:$0xff]  ;;  %v2106_v0 = vcombine.high %v96_v57, %v97_v59  ;;  %v74_v2 = vld [vmem:[#allocation2] sm:$0xff] }
  0x56   :  { %299 = vmatpush1.bf16.msra.mxu0 %v2089_v5  ;;  %584 = vmatpush1.bf16.msra.mxu1 %v2121_v6  ;;  %v2138_v1 = vcombine.high %v381_v60, %v382_v61  ;;  %v2362_v4 = vld [vmem:[#allocation8 + $0x174] ss:$8 sps:$4 sm:$0xff]   ;;  %v2105_v5 = vcombine.low %v96_v57, %v97_v59  ;;  %v2720_v9 = vpack.c.bf16 %v76_v3, %v74_v2  ;;  %v2363_v10 = vld [vmem:[#allocation8 + $0x70] ss:$8 sps:$4 sm:$0xff]   ;;  %v2368_v11 = vld [vmem:[#allocation8 + $0x164] ss:$8 sps:$4 sm:$0xff]  }
  0x57   :  { %300 = vmatprep.subr.bf16.mxu0 %v2120_v7  ;;  %585 = vmatprep.subr.bf16.mxu1 %v2152_v8  ;;  %v2365_v6 = vld [vmem:[#allocation8 + $0x74] ss:$8 sps:$4 sm:$0xff]   ;;  %v2137_v7 = vcombine.low %v381_v60, %v382_v61  ;;  %v2360_v8 = vld [vmem:[#allocation8 + $0x170] ss:$8 sps:$4 sm:$0xff]   ;;  %v2371_v12 = vld [vmem:[#allocation8 + $0x64] ss:$8 sps:$4 sm:$0xff]  }
  0x58   :  { %v2372_v17 = vld [vmem:[#allocation8 + $0x150] ss:$8 sps:$4 sm:$0xff]   ;;  %v2380_v19 = vld [vmem:[#allocation8 + $0x144] ss:$8 sps:$4 sm:$0xff]   ;;  %v2438_v61 = vld [vmem:[#allocation8 + $0x1a0] ss:$8 sps:$4 sm:$0xff]  }
  0x59   :  { %v2375_v18 = vld [vmem:[#allocation8 + $0x50] ss:$8 sps:$4 sm:$0xff]   ;;  %v2383_v20 = vld [vmem:[#allocation8 + $0x44] ss:$8 sps:$4 sm:$0xff]   ;;  %v2449_v2 = vld [vmem:[#allocation8 + $0x94] ss:$8 sps:$4 sm:$0xff]  }
  0x5a   :  { %301 = vmatpush2.bf16.msra.mxu0 %v2119_v13  ;;  %586 = vmatpush2.bf16.msra.mxu1 %v2151_v14  ;;  %v2366_v13 = vld [vmem:[#allocation8 + $0x160] ss:$8 sps:$4 sm:$0xff]   ;;  %v2384_v25 = vld [vmem:[#allocation8 + $0x130] ss:$8 sps:$4 sm:$0xff]   ;;  %v2392_v27 = vld [vmem:[#allocation8 + $0x124] ss:$8 sps:$4 sm:$0xff]  }
  0x5b   :  { %302 = vmatprep.subr.bf16.mxu0 %v2118_v15  ;;  %587 = vmatprep.subr.bf16.mxu1 %v2150_v16  ;;  %v2369_v14 = vld [vmem:[#allocation8 + $0x60] ss:$8 sps:$4 sm:$0xff]   ;;  %v2374_v15 = vld [vmem:[#allocation8 + $0x154] ss:$8 sps:$4 sm:$0xff]   ;;  %v2387_v26 = vld [vmem:[#allocation8 + $0x30] ss:$8 sps:$4 sm:$0xff]  }
  0x5c   :  { %v2377_v16 = vld [vmem:[#allocation8 + $0x54] ss:$8 sps:$4 sm:$0xff]   ;;  %v2395_v28 = vld [vmem:[#allocation8 + $0x24] ss:$8 sps:$4 sm:$0xff]   ;;  %v2396_v33 = vld [vmem:[#allocation8 + $0x110] ss:$8 sps:$4 sm:$0xff]  }
  0x5d   :  { %v2399_v34 = vld [vmem:[#allocation8 + $0x10] ss:$8 sps:$4 sm:$0xff]   ;;  %v2404_v35 = vld [vmem:[#allocation8 + $0x104] ss:$8 sps:$4 sm:$0xff]  }
  0x5e   :  { %303 = vmatpush2.bf16.msra.mxu0 %v2117_v21  ;;  %588 = vmatpush2.bf16.msra.mxu1 %v2149_v22  ;;  %v2378_v21 = vld [vmem:[#allocation8 + $0x140] ss:$8 sps:$4 sm:$0xff]   ;;  %v2407_v36 = vld [vmem:[#allocation8 + $0x4] ss:$8 sps:$4 sm:$0xff]   ;;  %v2408_v41 = vld [vmem:[#allocation8 + $0x1f0] ss:$8 sps:$4 sm:$0xff]  }
  0x5f   :  { %304 = vmatprep.subr.bf16.mxu0 %v2116_v23  ;;  %589 = vmatprep.subr.bf16.mxu1 %v2148_v24  ;;  %v2381_v22 = vld [vmem:[#allocation8 + $0x40] ss:$8 sps:$4 sm:$0xff]   ;;  %v2386_v23 = vld [vmem:[#allocation8 + $0x134] ss:$8 sps:$4 sm:$0xff]   ;;  %v2411_v42 = vld [vmem:[#allocation8 + $0xf0] ss:$8 sps:$4 sm:$0xff]  }
  0x60   :  { %v2389_v24 = vld [vmem:[#allocation8 + $0x34] ss:$8 sps:$4 sm:$0xff]   ;;  %v2416_v43 = vld [vmem:[#allocation8 + $0x1e4] ss:$8 sps:$4 sm:$0xff]   ;;  %v2420_v49 = vld [vmem:[#allocation8 + $0x1d0] ss:$8 sps:$4 sm:$0xff]  }
  0x61   :  { %v2419_v44 = vld [vmem:[#allocation8 + $0xe4] ss:$8 sps:$4 sm:$0xff]   ;;  %v2423_v50 = vld [vmem:[#allocation8 + $0xd0] ss:$8 sps:$4 sm:$0xff]  }
  0x62   :  { %305 = vmatpush2.bf16.msra.mxu0 %v2115_v29  ;;  %590 = vmatpush2.bf16.msra.mxu1 %v2147_v30  ;;  %v2390_v29 = vld [vmem:[#allocation8 + $0x120] ss:$8 sps:$4 sm:$0xff]   ;;  %v2428_v51 = vld [vmem:[#allocation8 + $0x1c4] ss:$8 sps:$4 sm:$0xff]   ;;  %v2432_v57 = vld [vmem:[#allocation8 + $0x1b0] ss:$8 sps:$4 sm:$0xff]  }
  0x63   :  { %306 = vmatprep.subr.bf16.mxu0 %v2114_v31  ;;  %591 = vmatprep.subr.bf16.mxu1 %v2146_v32  ;;  %v2393_v30 = vld [vmem:[#allocation8 + $0x20] ss:$8 sps:$4 sm:$0xff]   ;;  %v2398_v31 = vld [vmem:[#allocation8 + $0x114] ss:$8 sps:$4 sm:$0xff]   ;;  %v2431_v52 = vld [vmem:[#allocation8 + $0xc4] ss:$8 sps:$4 sm:$0xff]  }
  0x64   :  { %v2401_v32 = vld [vmem:[#allocation8 + $0x14] ss:$8 sps:$4 sm:$0xff]   ;;  %v2435_v59 = vld [vmem:[#allocation8 + $0xb0] ss:$8 sps:$4 sm:$0xff]   ;;  %v2440_v60 = vld [vmem:[#allocation8 + $0x1a4] ss:$8 sps:$4 sm:$0xff]  }
  0x65   :  { %v2447_v3 = vld [vmem:[#allocation8 + $0x90] ss:$8 sps:$4 sm:$0xff]  }
  0x66   :  { %307 = vmatpush2.bf16.msra.mxu0 %v2113_v37  ;;  %592 = vmatpush2.bf16.msra.mxu1 %v2145_v38  ;;  %v2402_v37 = vld [vmem:[#allocation8 + $0x100] ss:$8 sps:$4 sm:$0xff]  }
  0x67   :  { %308 = vmatprep.subr.bf16.mxu0 %v2112_v39  ;;  %593 = vmatprep.subr.bf16.mxu1 %v2144_v40  ;;  %v2405_v38 = vld [vmem:[#allocation8] ss:$8 sps:$4 sm:$0xff]   ;;  %v2410_v39 = vld [vmem:[#allocation8 + $0x1f4] ss:$8 sps:$4 sm:$0xff]  }
  0x68   :  { %v2413_v40 = vld [vmem:[#allocation8 + $0xf4] ss:$8 sps:$4 sm:$0xff]  }
  0x6a   :  { %309 = vmatpush2.bf16.msra.mxu0 %v2111_v45  ;;  %594 = vmatpush2.bf16.msra.mxu1 %v2143_v46  ;;  %v2414_v45 = vld [vmem:[#allocation8 + $0x1e0] ss:$8 sps:$4 sm:$0xff]  }
  0x6b   :  { %310 = vmatprep.subr.bf16.mxu0 %v2110_v47  ;;  %595 = vmatprep.subr.bf16.mxu1 %v2142_v48  ;;  %v2417_v46 = vld [vmem:[#allocation8 + $0xe0] ss:$8 sps:$4 sm:$0xff]   ;;  %v2422_v47 = vld [vmem:[#allocation8 + $0x1d4] ss:$8 sps:$4 sm:$0xff]  }
  0x6c   :  { %v2425_v48 = vld [vmem:[#allocation8 + $0xd4] ss:$8 sps:$4 sm:$0xff]  }
  0x6e   :  { %311 = vmatpush2.bf16.msra.mxu0 %v2109_v53  ;;  %596 = vmatpush2.bf16.msra.mxu1 %v2141_v54  ;;  %v2426_v53 = vld [vmem:[#allocation8 + $0x1c0] ss:$8 sps:$4 sm:$0xff]  }
  0x6f   :  { %312 = vmatprep.subr.bf16.mxu0 %v2108_v55  ;;  %597 = vmatprep.subr.bf16.mxu1 %v2140_v56  ;;  %v2429_v54 = vld [vmem:[#allocation8 + $0xc0] ss:$8 sps:$4 sm:$0xff]   ;;  %v2434_v55 = vld [vmem:[#allocation8 + $0x1b4] ss:$8 sps:$4 sm:$0xff]  }
  0x70   :  { %v2437_v56 = vld [vmem:[#allocation8 + $0xb4] ss:$8 sps:$4 sm:$0xff]  }
  0x72   :  { %313 = vmatpush2.bf16.msra.mxu0 %v2107_v62  ;;  %598 = vmatpush2.bf16.msra.mxu1 %v2139_v63  ;;  %v2443_v62 = vld [vmem:[#allocation8 + $0xa4] ss:$8 sps:$4 sm:$0xff]   ;;  %v2441_v63 = vld [vmem:[#allocation8 + $0xa0] ss:$8 sps:$4 sm:$0xff]  }
  0x73   :  { %314 = vmatprep.subr.bf16.mxu0 %v2106_v0  ;;  %599 = vmatprep.subr.bf16.mxu1 %v2138_v1  ;;  %v2446_v0 = vld [vmem:[#allocation8 + $0x194] ss:$8 sps:$4 sm:$0xff]   ;;  %v2444_v1 = vld [vmem:[#allocation8 + $0x190] ss:$8 sps:$4 sm:$0xff]  }
  0x76   :  { %315 = vmatpush2.bf16.msra.mxu0 %v2105_v5  ;;  %600 = vmatpush2.bf16.msra.mxu1 %v2137_v7  ;;  %v2450_v5 = vld [vmem:[#allocation8 + $0x180] ss:$8 sps:$4 sm:$0xff]  }
  0x77   :  { %810 = vmatprep.subr.bf16.mxu0 %v2362_v4  ;;  %1013 = vmatprep.subr.bf16.mxu1 %v2365_v6  ;;  %v2452_v4 = vld [vmem:[#allocation8 + $0x184] ss:$8 sps:$4 sm:$0xff]   ;;  %v2453_v7 = vld [vmem:[#allocation8 + $0x80] ss:$8 sps:$4 sm:$0xff]  }
  0x78   :  { %v2455_v6 = vld [vmem:[#allocation8 + $0x84] ss:$8 sps:$4 sm:$0xff]  }
  0x79   :  { %317 = vmatmul.mubr.bf16.vlgmr.msra.gmra.mxu0 %v2720_v9  ;;  %602 = vmatmul.mubr.bf16.vlgmr.msra.gmra.mxu1 %v2720_v9 }
  0x7a   :  { %811 = vmatpush1.bf16.msra.mxu0 %v2360_v8  ;;  %1014 = vmatpush1.bf16.msra.mxu1 %v2363_v10  ;;  %v1070_v8 = vld [vmem:[#allocation5 + $0x1d0] sm:$0xff] }
  0x7b   :  { %812 = vmatprep.subr.bf16.mxu0 %v2368_v11  ;;  %1015 = vmatprep.subr.bf16.mxu1 %v2371_v12  ;;  %v1071_v10 = vld [vmem:[#allocation5 + $0x1f0] sm:$0xff] }
  0x7c   :  { %v2232_v11 = vcombine.high %v1070_v8, %v1071_v10  ;;  %v2231_v12 = vcombine.low %v1070_v8, %v1071_v10  ;;  %v1059_v8 = vld [vmem:[#allocation5 + $0x70] sm:$0xff] }
  0x7e   :  { %813 = vmatpush1.bf16.msra.mxu0 %v2366_v13  ;;  %1016 = vmatpush1.bf16.msra.mxu1 %v2369_v14  ;;  %v114_v13 = vlaneseq }
  0x7f   :  { %814 = vmatprep.subr.bf16.mxu0 %v2374_v15  ;;  %1017 = vmatprep.subr.bf16.mxu1 %v2377_v16  ;;  %v112_v15 = vld [vmem:[#allocation7] sm:$0x3] }
  0x80   :  { %v115_v14 = vshrl.u32 %v114_v13, 7  ;;  %v1057_v13 = vld [vmem:[#allocation5 + $0x30] sm:$0xff] }
  0x82   :  { %815 = vmatpush1.bf16.msra.mxu0 %v2372_v17  ;;  %1018 = vmatpush1.bf16.msra.mxu1 %v2375_v18  ;;  %v2724_v16 = vsub.s32 0, %v115_v14  ;;  %v2726_v17 = vsub.s32 1, %v115_v14 }
  0x83   :  { %816 = vmatprep.subr.bf16.mxu0 %v2380_v19  ;;  %1019 = vmatprep.subr.bf16.mxu1 %v2383_v20 }
  0x84   :  { %v117_v18 = vrot.slane %v112_v15, %v2724_v16  ;;  %v121_v19 = vrot.slane %v112_v15, %v2726_v17 }
  0x86   :  { %817 = vmatpush1.bf16.msra.mxu0 %v2378_v21  ;;  %1020 = vmatpush1.bf16.msra.mxu1 %v2381_v22  ;;  %v397_v21 = vld [vmem:[#allocation7 + $0x2] sm:$0x3] }
  0x87   :  { %818 = vmatprep.subr.bf16.mxu0 %v2386_v23  ;;  %1021 = vmatprep.subr.bf16.mxu1 %v2389_v24 }
  0x8a   :  { %819 = vmatpush1.bf16.msra.mxu0 %v2384_v25  ;;  %1022 = vmatpush1.bf16.msra.mxu1 %v2387_v26  ;;  %v406_v25 = vrot.slane %v397_v21, %v2726_v17  ;;  %v402_v26 = vrot.slane %v397_v21, %v2724_v16 }
  0x8b   :  { %820 = vmatprep.subr.bf16.mxu0 %v2392_v27  ;;  %1023 = vmatprep.subr.bf16.mxu1 %v2395_v28 }
  0x8e   :  { %821 = vmatpush1.bf16.msra.mxu0 %v2390_v29  ;;  %1024 = vmatpush1.bf16.msra.mxu1 %v2393_v30 }
  0x8f   :  { %822 = vmatprep.subr.bf16.mxu0 %v2398_v31  ;;  %1025 = vmatprep.subr.bf16.mxu1 %v2401_v32 }
  0x92   :  { %823 = vmatpush1.bf16.msra.mxu0 %v2396_v33  ;;  %1026 = vmatpush1.bf16.msra.mxu1 %v2399_v34 }
  0x93   :  { %824 = vmatprep.subr.bf16.mxu0 %v2404_v35  ;;  %1027 = vmatprep.subr.bf16.mxu1 %v2407_v36 }
  0x96   :  { %825 = vmatpush1.bf16.msra.mxu0 %v2402_v37  ;;  %1028 = vmatpush1.bf16.msra.mxu1 %v2405_v38 }
  0x97   :  { %826 = vmatprep.subr.bf16.mxu0 %v2410_v39  ;;  %1029 = vmatprep.subr.bf16.mxu1 %v2413_v40 }
  0x9a   :  { %827 = vmatpush2.bf16.msra.mxu0 %v2408_v41  ;;  %1030 = vmatpush2.bf16.msra.mxu1 %v2411_v42 }
  0x9b   :  { %828 = vmatprep.subr.bf16.mxu0 %v2416_v43  ;;  %1031 = vmatprep.subr.bf16.mxu1 %v2419_v44 }
  0x9e   :  { %829 = vmatpush2.bf16.msra.mxu0 %v2414_v45  ;;  %1032 = vmatpush2.bf16.msra.mxu1 %v2417_v46 }
  0x9f   :  { %830 = vmatprep.subr.bf16.mxu0 %v2422_v47  ;;  %1033 = vmatprep.subr.bf16.mxu1 %v2425_v48  ;;  %v1068_v47 = vld [vmem:[#allocation5 + $0x190] sm:$0xff] }
  0xa0   :  { %v1069_v48 = vld [vmem:[#allocation5 + $0x1b0] sm:$0xff] }
  0xa2   :  { %831 = vmatpush2.bf16.msra.mxu0 %v2420_v49  ;;  %1034 = vmatpush2.bf16.msra.mxu1 %v2423_v50 }
  0xa3   :  { %832 = vmatprep.subr.bf16.mxu0 %v2428_v51  ;;  %1035 = vmatprep.subr.bf16.mxu1 %v2431_v52 }
  0xa6   :  { %833 = vmatpush2.bf16.msra.mxu0 %v2426_v53  ;;  %1036 = vmatpush2.bf16.msra.mxu1 %v2429_v54  ;;  %v2230_v53 = vcombine.high %v1068_v47, %v1069_v48  ;;  %v1066_v54 = vld [vmem:[#allocation5 + $0x150] sm:$0xff] }
  0xa7   :  { %834 = vmatprep.subr.bf16.mxu0 %v2434_v55  ;;  %1037 = vmatprep.subr.bf16.mxu1 %v2437_v56  ;;  %v1067_v55 = vld [vmem:[#allocation5 + $0x170] sm:$0xff]  ;;  %v2229_v56 = vcombine.low %v1068_v47, %v1069_v48 }
  0xa8   :  { %v1073_v47 = vld [vmem:[#allocation5 + $0x230] sm:$0xff] }
  0xaa   :  { %835 = vmatpush2.bf16.msra.mxu0 %v2432_v57  ;;  %1038 = vmatpush2.bf16.msra.mxu1 %v2435_v59  ;;  %v2228_v57 = vcombine.high %v1066_v54, %v1067_v55  ;;  %v1064_v59 = vld [vmem:[#allocation5 + $0x110] sm:$0xff] }
  0xab   :  { %836 = vmatprep.subr.bf16.mxu0 %v2440_v60  ;;  %1039 = vmatprep.subr.bf16.mxu1 %v2443_v62  ;;  %v1065_v60 = vld [vmem:[#allocation5 + $0x130] sm:$0xff] }
  0xac   :  { %v2226_v62 = vcombine.high %v1064_v59, %v1065_v60 }
  0xae   :  { %837 = vmatpush2.bf16.msra.mxu0 %v2438_v61  ;;  %1040 = vmatpush2.bf16.msra.mxu1 %v2441_v63  ;;  %v2227_v61 = vcombine.low %v1066_v54, %v1067_v55  ;;  %v1062_v63 = vld [vmem:[#allocation5 + $0xd0] sm:$0xff]  ;;  %v1560_v54 = vld [vmem:[#allocation5 + $0x198] sm:$0xff] }
  0xaf   :  { %838 = vmatprep.subr.bf16.mxu0 %v2446_v0  ;;  %1041 = vmatprep.subr.bf16.mxu1 %v2449_v2  ;;  %v1063_v0 = vld [vmem:[#allocation5 + $0xf0] sm:$0xff]  ;;  %v1561_v55 = vld [vmem:[#allocation5 + $0x1b8] sm:$0xff] }
  0xb0   :  { %v2224_v2 = vcombine.high %v1062_v63, %v1063_v0 }
  0xb2   :  { %839 = vmatpush2.bf16.msra.mxu0 %v2444_v1  ;;  %1042 = vmatpush2.bf16.msra.mxu1 %v2447_v3  ;;  %v2225_v1 = vcombine.low %v1064_v59, %v1065_v60  ;;  %v1060_v3 = vld [vmem:[#allocation5 + $0x90] sm:$0xff]  ;;  %v1558_v59 = vld [vmem:[#allocation5 + $0x158] sm:$0xff] }
  0xb3   :  { %840 = vmatprep.subr.bf16.mxu0 %v2452_v4  ;;  %1043 = vmatprep.subr.bf16.mxu1 %v2455_v6  ;;  %v1061_v4 = vld [vmem:[#allocation5 + $0xb0] sm:$0xff]  ;;  %v1559_v60 = vld [vmem:[#allocation5 + $0x178] sm:$0xff] }
  0xb4   :  { %v2222_v6 = vcombine.high %v1060_v3, %v1061_v4  ;;  %v2221_v10 = vcombine.low %v1060_v3, %v1061_v4  ;;  %v1554_v3 = vld [vmem:[#allocation5 + $0xd8] sm:$0xff] }
  0xb5   :  { %v1555_v4 = vld [vmem:[#allocation5 + $0xf8] sm:$0xff] }
  0xb6   :  { %841 = vmatpush2.bf16.msra.mxu0 %v2450_v5  ;;  %1044 = vmatpush2.bf16.msra.mxu1 %v2453_v7  ;;  %v2223_v5 = vcombine.low %v1062_v63, %v1063_v0  ;;  %v1058_v7 = vld [vmem:[#allocation5 + $0x50] sm:$0xff]  ;;  %v1556_v63 = vld [vmem:[#allocation5 + $0x118] sm:$0xff] }
  0xb7   :  { %1260 = vmatprep.subr.bf16.mxu0 %v2232_v11  ;;  %v2220_v11 = vcombine.high %v1058_v7, %v1059_v8  ;;  %v2219_v14 = vcombine.low %v1058_v7, %v1059_v8  ;;  %v1557_v0 = vld [vmem:[#allocation5 + $0x138] sm:$0xff]  ;;  %v2461_v7 = vld [vmem:[#allocation8 + $0x264] ss:$8 sps:$4 sm:$0xff]  }
  0xb8   :  { %v2289_v8 = vcombine.low %v1556_v63, %v1557_v0 }
 0x139   :  { %v318_v20 = vpop.f32.mrf.mxu0  ;;  %v603_v22 = vpop.f32.mrf.mxu1 }
 0x13a   :  { %v319_v23 = vadd.f32 %v318_v20, %v117_v18  ;;  %v604_v36 = vadd.f32 %v603_v22, %v402_v26  ;;  %v1084_v22 = vld [vmem:[#allocation5 + $0x390] sm:$0xff] }
 0x13b   :  { %v320_v24 = vpop.f32.mrf.mxu0  ;;  %v605_v28 = vpop.f32.mrf.mxu1 }
 0x13c   :  { %v321_v27 = vadd.f32 %v320_v24, %v121_v19  ;;  %v327_v32 = vmax.f32 %v319_v23, 0.0  ;;  %v606_v33 = vadd.f32 %v605_v28, %v406_v25  ;;  %v612_v49 = vmax.f32 %v604_v36, 0.0  ;;  %v1085_v23 = vld [vmem:[#allocation5 + $0x3b0] sm:$0xff] }
 0x13d   :  { %v322_v29 = vpop.f32.mrf.mxu0  ;;  %v607_v31 = vpop.f32.mrf.mxu1  ;;  %v2245_v28 = vcombine.low %v1084_v22, %v1085_v23 }
 0x13e   :  { %v323_v30 = vadd.f32 %v322_v29, %v117_v18  ;;  %v608_v34 = vadd.f32 %v607_v31, %v402_v26  ;;  %v328_v37 = vmax.f32 %v321_v27, 0.0  ;;  %v613_v44 = vmax.f32 %v606_v33, 0.0  ;;  %v1086_v18 = vld [vmem:[#allocation5 + $0x3d0] sm:$0xff] }
 0x13f   :  { %v324_v35 = vpop.f32.mrf.mxu0  ;;  %v609_v40 = vpop.f32.mrf.mxu1  ;;  %v1082_v26 = vld [vmem:[#allocation5 + $0x350] sm:$0xff] }
 0x140   :  { %v329_v38 = vmax.f32 %v323_v30, 0.0  ;;  %v325_v39 = vadd.f32 %v324_v35, %v121_v19  ;;  %v610_v41 = vadd.f32 %v609_v40, %v406_v25  ;;  %v614_v42 = vmax.f32 %v608_v34, 0.0  ;;  %v1087_v19 = vld [vmem:[#allocation5 + $0x3f0] sm:$0xff] }
 0x141   :  { %v2248_v21 = vcombine.high %v1086_v18, %v1087_v19  ;;  %v2247_v24 = vcombine.low %v1086_v18, %v1087_v19  ;;  %v2246_v25 = vcombine.high %v1084_v22, %v1085_v23  ;;  %v1083_v27 = vld [vmem:[#allocation5 + $0x370] sm:$0xff]  ;;  %v2462_v18 = vld [vmem:[#allocation8 + $0x250] ss:$8 sps:$4 sm:$0xff]  }
 0x142   :  { %v330_v43 = vmax.f32 %v325_v39, 0.0  ;;  %v331_v45 = vpack.c.bf16 %v329_v38, %v327_v32  ;;  %v615_v46 = vmax.f32 %v610_v41, 0.0  ;;  %v616_v52 = vpack.c.bf16 %v614_v42, %v612_v49  ;;  %v1080_v30 = vld [vmem:[#allocation5 + $0x310] sm:$0xff]  ;;  %v1550_v19 = vld [vmem:[#allocation5 + $0x58] sm:$0xff] }
 0x143   :  { %v2244_v29 = vcombine.high %v1082_v26, %v1083_v27  ;;  %v1081_v31 = vld [vmem:[#allocation5 + $0x330] sm:$0xff]  ;;  %v2243_v32 = vcombine.low %v1082_v26, %v1083_v27  ;;  %v1549_v26 = vld [vmem:[#allocation5 + $0x38] sm:$0xff] }
 0x144   :  { %v332_v50 = vpack.c.bf16 %v330_v43, %v328_v37  ;;  %v617_v51 = vpack.c.bf16 %v615_v46, %v613_v44  ;;  %v2242_v33 = vcombine.high %v1080_v30, %v1081_v31  ;;  %v1078_v34 = vld [vmem:[#allocation5 + $0x2d0] sm:$0xff]  ;;  %v2241_v36 = vcombine.low %v1080_v30, %v1081_v31  ;;  %v2470_v27 = vld [vmem:[#allocation8 + $0x234] ss:$8 sps:$4 sm:$0xff]   ;;  %v2468_v30 = vld [vmem:[#allocation8 + $0x230] ss:$8 sps:$4 sm:$0xff]  }
 0x145   :  { %v1079_v35 = vld [vmem:[#allocation5 + $0x2f0] sm:$0xff]  ;;  %v1578_v31 = vld [vmem:[#allocation5 + $0x3d8] sm:$0xff] }
 0x146   :  { %1045 = vmatprep.mubr.bf16.mxu1 %v332_v50  ;;  %842 = vmatprep.mubr.bf16.mxu0 %v617_v51  ;;  %v2240_v37 = vcombine.high %v1078_v34, %v1079_v35  ;;  %v1076_v38 = vld [vmem:[#allocation5 + $0x290] sm:$0xff]  ;;  %v2239_v40 = vcombine.low %v1078_v34, %v1079_v35  ;;  %v1562_v50 = vld [vmem:[#allocation5 + $0x1d8] sm:$0xff] }
 0x147   :  { %1046 = vmatmul.mubr.bf16.vlgmr.msra.gmra.mxu1 %v331_v45  ;;  %843 = vmatmul.mubr.bf16.vlgmr.msra.gmra.mxu0 %v616_v52  ;;  %v1077_v39 = vld [vmem:[#allocation5 + $0x2b0] sm:$0xff]  ;;  %v1563_v51 = vld [vmem:[#allocation5 + $0x1f8] sm:$0xff] }
 0x148   :  { %1261 = vmatpush1.bf16.msra.mxu0 %v2231_v12  ;;  %1292 = vmatprep.mubr.bf16.mxu0 %v2716_v58  ;;  %v1056_v12 = vld [vmem:[#allocation5 + $0x10] sm:$0xff]  ;;  %v2238_v41 = vcombine.high %v1076_v38, %v1077_v39  ;;  %v2237_v44 = vcombine.low %v1076_v38, %v1077_v39  ;;  %v1577_v38 = vld [vmem:[#allocation5 + $0x3b8] sm:$0xff] }
 0x149   :  { %1262 = vmatprep.subr.bf16.mxu0 %v2230_v53  ;;  %v2218_v15 = vcombine.high %v1056_v12, %v1057_v13  ;;  %v2217_v20 = vcombine.low %v1056_v12, %v1057_v13  ;;  %v1074_v42 = vld [vmem:[#allocation5 + $0x250] sm:$0xff]  ;;  %v2296_v53 = vcombine.high %v1562_v50, %v1563_v51  ;;  %v1553_v12 = vld [vmem:[#allocation5 + $0xb8] sm:$0xff] }
 0x14a   :  { %v1075_v43 = vld [vmem:[#allocation5 + $0x270] sm:$0xff]  ;;  %v2464_v13 = vld [vmem:[#allocation8 + $0x254] ss:$8 sps:$4 sm:$0xff]  }
 0x14b   :  { %v2236_v45 = vcombine.high %v1074_v42, %v1075_v43  ;;  %v1072_v46 = vld [vmem:[#allocation5 + $0x210] sm:$0xff]  ;;  %v2235_v48 = vcombine.low %v1074_v42, %v1075_v43  ;;  %v2476_v39 = vld [vmem:[#allocation8 + $0x214] ss:$8 sps:$4 sm:$0xff]   ;;  %v2474_v42 = vld [vmem:[#allocation8 + $0x210] ss:$8 sps:$4 sm:$0xff]  }
 0x14c   :  { %1263 = vmatpush1.bf16.msra.mxu0 %v2229_v56  ;;  %v2234_v49 = vcombine.high %v1072_v46, %v1073_v47  ;;  %v2233_v52 = vcombine.low %v1072_v46, %v1073_v47  ;;  %v2295_v56 = vcombine.low %v1562_v50, %v1563_v51  ;;  %v1574_v43 = vld [vmem:[#allocation5 + $0x358] sm:$0xff] }
 0x14d   :  { %1264 = vmatprep.subr.bf16.mxu0 %v2228_v57  ;;  %v2294_v57 = vcombine.high %v1560_v54, %v1561_v55  ;;  %v1573_v50 = vld [vmem:[#allocation5 + $0x338] sm:$0xff] }
 0x14e   :  { %v2482_v51 = vld [vmem:[#allocation8 + $0x2f4] ss:$8 sps:$4 sm:$0xff]  }
 0x150   :  { %1265 = vmatpush1.bf16.msra.mxu0 %v2227_v61  ;;  %v2293_v61 = vcombine.low %v1560_v54, %v1561_v55  ;;  %v2480_v54 = vld [vmem:[#allocation8 + $0x2f0] ss:$8 sps:$4 sm:$0xff]  }
 0x151   :  { %1266 = vmatprep.subr.bf16.mxu0 %v2226_v62  ;;  %v2292_v62 = vcombine.high %v1558_v59, %v1559_v60  ;;  %v1570_v55 = vld [vmem:[#allocation5 + $0x2d8] sm:$0xff] }
 0x154   :  { %1267 = vmatpush1.bf16.msra.mxu0 %v2225_v1  ;;  %v2291_v1 = vcombine.low %v1558_v59, %v1559_v60 }
 0x155   :  { %1268 = vmatprep.subr.bf16.mxu0 %v2224_v2  ;;  %v2290_v2 = vcombine.high %v1556_v63, %v1557_v0  ;;  %v1569_v63 = vld [vmem:[#allocation5 + $0x2b8] sm:$0xff] }
 0x156   :  { %v2488_v0 = vld [vmem:[#allocation8 + $0x2d4] ss:$8 sps:$4 sm:$0xff]  }
 0x158   :  { %1269 = vmatpush1.bf16.msra.mxu0 %v2223_v5  ;;  %v2456_v5 = vld [vmem:[#allocation8 + $0x270] ss:$8 sps:$4 sm:$0xff]  }
 0x159   :  { %1270 = vmatprep.subr.bf16.mxu0 %v2222_v6  ;;  %v2458_v6 = vld [vmem:[#allocation8 + $0x274] ss:$8 sps:$4 sm:$0xff]  }
 0x15a   :  { %1501 = vmatprep.subr.bf16.mxu1 %v2458_v6  ;;  %v2491_v6 = vld [vmem:[#allocation8 + $0x2c4] ss:$8 sps:$4 sm:$0xff]  }
 0x15b   :  { %1502 = vmatpush1.bf16.msra.mxu1 %v2456_v5  ;;  %v1567_v5 = vld [vmem:[#allocation5 + $0x278] sm:$0xff] }
 0x15c   :  { %1271 = vmatpush1.bf16.msra.mxu0 %v2221_v10  ;;  %v2288_v10 = vcombine.high %v1554_v3, %v1555_v4  ;;  %1503 = vmatprep.subr.bf16.mxu1 %v2461_v7 }
 0x15d   :  { %1272 = vmatprep.subr.bf16.mxu0 %v2220_v11  ;;  %v1552_v11 = vld [vmem:[#allocation5 + $0x98] sm:$0xff] }
 0x15e   :  { %v2285_v22 = vcombine.low %v1552_v11, %v1553_v12 }
 0x160   :  { %1273 = vmatpush1.bf16.msra.mxu0 %v2219_v14  ;;  %v2287_v14 = vcombine.low %v1554_v3, %v1555_v4  ;;  %v2486_v3 = vld [vmem:[#allocation8 + $0x2d0] ss:$8 sps:$4 sm:$0xff]  }
 0x161   :  { %1274 = vmatprep.subr.bf16.mxu0 %v2218_v15  ;;  %v2286_v15 = vcombine.high %v1552_v11, %v1553_v12  ;;  %v1566_v4 = vld [vmem:[#allocation5 + $0x258] sm:$0xff] }
 0x162   :  { %v1565_v11 = vld [vmem:[#allocation5 + $0x238] sm:$0xff] }
 0x163   :  { %v2494_v12 = vld [vmem:[#allocation8 + $0x2b4] ss:$8 sps:$4 sm:$0xff]  }
 0x164   :  { %1275 = vmatpush1.bf16.msra.mxu0 %v2217_v20  ;;  %v1551_v20 = vld [vmem:[#allocation5 + $0x78] sm:$0xff] }
 0x165   :  { %1276 = vmatprep.subr.bf16.mxu0 %v2248_v21  ;;  %v2467_v21 = vld [vmem:[#allocation8 + $0x244] ss:$8 sps:$4 sm:$0xff]   ;;  %v2284_v23 = vcombine.high %v1550_v19, %v1551_v20 }
 0x168   :  { %1277 = vmatpush2.bf16.msra.mxu0 %v2247_v24  ;;  %v2465_v24 = vld [vmem:[#allocation8 + $0x240] ss:$8 sps:$4 sm:$0xff]  }
 0x169   :  { %1278 = vmatprep.subr.bf16.mxu0 %v2246_v25  ;;  %v1548_v25 = vld [vmem:[#allocation5 + $0x18] sm:$0xff] }
 0x16a   :  { %v2281_v34 = vcombine.low %v1548_v25, %v1549_v26 }
 0x16c   :  { %1279 = vmatpush2.bf16.msra.mxu0 %v2245_v28  ;;  %v2283_v28 = vcombine.low %v1550_v19, %v1551_v20  ;;  %v2497_v19 = vld [vmem:[#allocation8 + $0x2a4] ss:$8 sps:$4 sm:$0xff]   ;;  %v2495_v20 = vld [vmem:[#allocation8 + $0x2a0] ss:$8 sps:$4 sm:$0xff]  }
 0x16d   :  { %1280 = vmatprep.subr.bf16.mxu0 %v2244_v29  ;;  %v2282_v29 = vcombine.high %v1548_v25, %v1549_v26  ;;  %v2506_v25 = vld [vmem:[#allocation8 + $0x374] ss:$8 sps:$4 sm:$0xff]  }
 0x170   :  { %1281 = vmatpush2.bf16.msra.mxu0 %v2243_v32  ;;  %v1579_v32 = vld [vmem:[#allocation5 + $0x3f8] sm:$0xff] }
 0x171   :  { %1282 = vmatprep.subr.bf16.mxu0 %v2242_v33  ;;  %v2473_v33 = vld [vmem:[#allocation8 + $0x224] ss:$8 sps:$4 sm:$0xff]   ;;  %v2312_v35 = vcombine.high %v1578_v31, %v1579_v32 }
 0x174   :  { %1283 = vmatpush2.bf16.msra.mxu0 %v2241_v36  ;;  %v2471_v36 = vld [vmem:[#allocation8 + $0x220] ss:$8 sps:$4 sm:$0xff]  }
 0x175   :  { %1284 = vmatprep.subr.bf16.mxu0 %v2240_v37  ;;  %v1576_v37 = vld [vmem:[#allocation5 + $0x398] sm:$0xff] }
 0x176   :  { %v2309_v46 = vcombine.low %v1576_v37, %v1577_v38 }
 0x178   :  { %1285 = vmatpush2.bf16.msra.mxu0 %v2239_v40  ;;  %v2311_v40 = vcombine.low %v1578_v31, %v1579_v32 }
 0x179   :  { %1286 = vmatprep.subr.bf16.mxu0 %v2238_v41  ;;  %v2310_v41 = vcombine.high %v1576_v37, %v1577_v38 }
 0x17c   :  { %1287 = vmatpush2.bf16.msra.mxu0 %v2237_v44  ;;  %v1575_v44 = vld [vmem:[#allocation5 + $0x378] sm:$0xff] }
 0x17d   :  { %1288 = vmatprep.subr.bf16.mxu0 %v2236_v45  ;;  %v2479_v45 = vld [vmem:[#allocation8 + $0x204] ss:$8 sps:$4 sm:$0xff]   ;;  %v2308_v47 = vcombine.high %v1574_v43, %v1575_v44 }
 0x180   :  { %1289 = vmatpush2.bf16.msra.mxu0 %v2235_v48  ;;  %v2477_v48 = vld [vmem:[#allocation8 + $0x200] ss:$8 sps:$4 sm:$0xff]  }
 0x181   :  { %1290 = vmatprep.subr.bf16.mxu0 %v2234_v49  ;;  %v1572_v49 = vld [vmem:[#allocation5 + $0x318] sm:$0xff] }
 0x182   :  { %v2305_v59 = vcombine.low %v1572_v49, %v1573_v50 }
 0x184   :  { %1291 = vmatpush2.bf16.msra.mxu0 %v2233_v52  ;;  %v2307_v52 = vcombine.low %v1574_v43, %v1575_v44 }
 0x185   :  { %1752 = vmatprep.subr.bf16.mxu0 %v2296_v53  ;;  %v2306_v53 = vcombine.high %v1572_v49, %v1573_v50  ;;  %v2512_v49 = vld [vmem:[#allocation8 + $0x354] ss:$8 sps:$4 sm:$0xff]   ;;  %v2510_v50 = vld [vmem:[#allocation8 + $0x350] ss:$8 sps:$4 sm:$0xff]  }
 0x187   :  { %1293 = vmatmul.mubr.bf16.vlgmr.msra.gmra.mxu0 %v2720_v9 }
 0x188   :  { %1753 = vmatpush1.bf16.msra.mxu0 %v2295_v56  ;;  %1784 = vmatprep.mubr.bf16.mxu0 %v2716_v58  ;;  %v2459_v58 = vld [vmem:[#allocation8 + $0x260] ss:$8 sps:$4 sm:$0xff]   ;;  %v1571_v56 = vld [vmem:[#allocation5 + $0x2f8] sm:$0xff] }
 0x189   :  { %1754 = vmatprep.subr.bf16.mxu0 %v2294_v57  ;;  %1504 = vmatpush1.bf16.msra.mxu1 %v2459_v58  ;;  %v2485_v57 = vld [vmem:[#allocation8 + $0x2e4] ss:$8 sps:$4 sm:$0xff]   ;;  %v2304_v60 = vcombine.high %v1570_v55, %v1571_v56  ;;  %v1564_v58 = vld [vmem:[#allocation5 + $0x218] sm:$0xff] }
 0x18a   :  { %1505 = vmatprep.subr.bf16.mxu1 %v2464_v13  ;;  %v2299_v13 = vcombine.low %v1566_v4, %v1567_v5 }
 0x18c   :  { %1755 = vmatpush1.bf16.msra.mxu0 %v2293_v61  ;;  %v2483_v61 = vld [vmem:[#allocation8 + $0x2e0] ss:$8 sps:$4 sm:$0xff]  }
 0x18d   :  { %1756 = vmatprep.subr.bf16.mxu0 %v2292_v62  ;;  %1506 = vmatpush1.bf16.msra.mxu1 %v2462_v18  ;;  %v1568_v62 = vld [vmem:[#allocation5 + $0x298] sm:$0xff]  ;;  %v2297_v18 = vcombine.low %v1564_v58, %v1565_v11 }
 0x18e   :  { %1507 = vmatprep.subr.bf16.mxu1 %v2467_v21  ;;  %v2301_v7 = vcombine.low %v1568_v62, %v1569_v63  ;;  %v2500_v21 = vld [vmem:[#allocation8 + $0x294] ss:$8 sps:$4 sm:$0xff]  }
 0x190   :  { %1757 = vmatpush1.bf16.msra.mxu0 %v2291_v1  ;;  %v2303_v1 = vcombine.low %v1570_v55, %v1571_v56  ;;  %v2521_v55 = vld [vmem:[#allocation8 + $0x324] ss:$8 sps:$4 sm:$0xff]   ;;  %v2519_v56 = vld [vmem:[#allocation8 + $0x320] ss:$8 sps:$4 sm:$0xff]  }
 0x191   :  { %1758 = vmatprep.subr.bf16.mxu0 %v2290_v2  ;;  %1508 = vmatpush1.bf16.msra.mxu1 %v2465_v24  ;;  %v2302_v2 = vcombine.high %v1568_v62, %v1569_v63  ;;  %v2501_v24 = vld [vmem:[#allocation8 + $0x280] ss:$8 sps:$4 sm:$0xff]   ;;  %v2530_v62 = vld [vmem:[#allocation8 + $0x3f4] ss:$8 sps:$4 sm:$0xff]   ;;  %v2528_v63 = vld [vmem:[#allocation8 + $0x3f0] ss:$8 sps:$4 sm:$0xff]  }
 0x192   :  { %1509 = vmatprep.subr.bf16.mxu1 %v2470_v27 }
 0x194   :  { %1759 = vmatpush1.bf16.msra.mxu0 %v2289_v8  ;;  %v2300_v8 = vcombine.high %v1566_v4, %v1567_v5  ;;  %v2539_v4 = vld [vmem:[#allocation8 + $0x3c4] ss:$8 sps:$4 sm:$0xff]   ;;  %v2537_v5 = vld [vmem:[#allocation8 + $0x3c0] ss:$8 sps:$4 sm:$0xff]  }
 0x195   :  { %1760 = vmatprep.subr.bf16.mxu0 %v2288_v10  ;;  %1510 = vmatpush1.bf16.msra.mxu1 %v2468_v30  ;;  %v2489_v10 = vld [vmem:[#allocation8 + $0x2c0] ss:$8 sps:$4 sm:$0xff]  }
 0x196   :  { %1511 = vmatprep.subr.bf16.mxu1 %v2473_v33 }
 0x198   :  { %1761 = vmatpush1.bf16.msra.mxu0 %v2287_v14  ;;  %v2298_v14 = vcombine.high %v1564_v58, %v1565_v11  ;;  %v2543_v58 = vld [vmem:[#allocation8 + $0x3a0] ss:$8 sps:$4 sm:$0xff]  }
 0x199   :  { %1762 = vmatprep.subr.bf16.mxu0 %v2286_v15  ;;  %1512 = vmatpush1.bf16.msra.mxu1 %v2471_v36  ;;  %v2492_v15 = vld [vmem:[#allocation8 + $0x2b0] ss:$8 sps:$4 sm:$0xff]  }
 0x19a   :  { %1513 = vmatprep.subr.bf16.mxu1 %v2476_v39 }
 0x19c   :  { %1763 = vmatpush1.bf16.msra.mxu0 %v2285_v22  ;;  %v2498_v22 = vld [vmem:[#allocation8 + $0x290] ss:$8 sps:$4 sm:$0xff]  }
 0x19d   :  { %1764 = vmatprep.subr.bf16.mxu0 %v2284_v23  ;;  %1514 = vmatpush1.bf16.msra.mxu1 %v2474_v42  ;;  %v2503_v23 = vld [vmem:[#allocation8 + $0x284] ss:$8 sps:$4 sm:$0xff]  }
 0x19e   :  { %1515 = vmatprep.subr.bf16.mxu1 %v2479_v45  ;;  %v2504_v45 = vld [vmem:[#allocation8 + $0x370] ss:$8 sps:$4 sm:$0xff]  }
 0x1a0   :  { %1765 = vmatpush1.bf16.msra.mxu0 %v2283_v28 }
 0x1a1   :  { %1766 = vmatprep.subr.bf16.mxu0 %v2282_v29  ;;  %1516 = vmatpush1.bf16.msra.mxu1 %v2477_v48  ;;  %v1088_v29 = vld [vmem:[#allocation7 + $0x4] sm:$0x3]  ;;  %v2507_v48 = vld [vmem:[#allocation8 + $0x360] ss:$8 sps:$4 sm:$0xff]  }
 0x1a2   :  { %1517 = vmatprep.subr.bf16.mxu1 %v2482_v51  ;;  %v1097_v31 = vrot.slane %v1088_v29, %v2726_v17  ;;  %v1093_v32 = vrot.slane %v1088_v29, %v2724_v16  ;;  %v2515_v51 = vld [vmem:[#allocation8 + $0x344] ss:$8 sps:$4 sm:$0xff]   ;;  %v2549_v29 = vld [vmem:[#allocation8 + $0x380] ss:$8 sps:$4 sm:$0xff]  }
 0x1a4   :  { %1767 = vmatpush1.bf16.msra.mxu0 %v2281_v34 }
 0x1a5   :  { %1768 = vmatprep.subr.bf16.mxu0 %v2312_v35  ;;  %1518 = vmatpush2.bf16.msra.mxu1 %v2480_v54  ;;  %v2516_v54 = vld [vmem:[#allocation8 + $0x330] ss:$8 sps:$4 sm:$0xff]  }
 0x1a6   :  { %1519 = vmatprep.subr.bf16.mxu1 %v2485_v57  ;;  %v2524_v57 = vld [vmem:[#allocation8 + $0x314] ss:$8 sps:$4 sm:$0xff]  }
 0x1a8   :  { %1769 = vmatpush2.bf16.msra.mxu0 %v2311_v40 }
 0x1a9   :  { %1770 = vmatprep.subr.bf16.mxu0 %v2310_v41  ;;  %1520 = vmatpush2.bf16.msra.mxu1 %v2483_v61  ;;  %v2525_v61 = vld [vmem:[#allocation8 + $0x300] ss:$8 sps:$4 sm:$0xff]  }
 0x1aa   :  { %1521 = vmatprep.subr.bf16.mxu1 %v2488_v0  ;;  %v2533_v0 = vld [vmem:[#allocation8 + $0x3e4] ss:$8 sps:$4 sm:$0xff]  }
 0x1ac   :  { %1771 = vmatpush2.bf16.msra.mxu0 %v2309_v46 }
 0x1ad   :  { %1772 = vmatprep.subr.bf16.mxu0 %v2308_v47  ;;  %1522 = vmatpush2.bf16.msra.mxu1 %v2486_v3  ;;  %v2509_v47 = vld [vmem:[#allocation8 + $0x364] ss:$8 sps:$4 sm:$0xff]   ;;  %v2534_v3 = vld [vmem:[#allocation8 + $0x3d0] ss:$8 sps:$4 sm:$0xff]  }
 0x1ae   :  { %1523 = vmatprep.subr.bf16.mxu1 %v2491_v6  ;;  %v2542_v6 = vld [vmem:[#allocation8 + $0x3b4] ss:$8 sps:$4 sm:$0xff]  }
 0x1b0   :  { %1773 = vmatpush2.bf16.msra.mxu0 %v2307_v52  ;;  %v2513_v52 = vld [vmem:[#allocation8 + $0x340] ss:$8 sps:$4 sm:$0xff]  }
 0x1b1   :  { %1774 = vmatprep.subr.bf16.mxu0 %v2306_v53  ;;  %1524 = vmatpush2.bf16.msra.mxu1 %v2489_v10  ;;  %v2518_v53 = vld [vmem:[#allocation8 + $0x334] ss:$8 sps:$4 sm:$0xff]  }
 0x1b2   :  { %1525 = vmatprep.subr.bf16.mxu1 %v2494_v12  ;;  %v1580_v10 = vld [vmem:[#allocation7 + $0x6] sm:$0x3] }
 0x1b3   :  { %v2548_v12 = vld [vmem:[#allocation8 + $0x394] ss:$8 sps:$4 sm:$0xff]  }
 0x1b4   :  { %1775 = vmatpush2.bf16.msra.mxu0 %v2305_v59  ;;  %v2522_v59 = vld [vmem:[#allocation8 + $0x310] ss:$8 sps:$4 sm:$0xff]  }
 0x1b5   :  { %1776 = vmatprep.subr.bf16.mxu0 %v2304_v60  ;;  %1526 = vmatpush2.bf16.msra.mxu1 %v2492_v15  ;;  %v2527_v60 = vld [vmem:[#allocation8 + $0x304] ss:$8 sps:$4 sm:$0xff]  }
 0x1b6   :  { %1527 = vmatprep.subr.bf16.mxu1 %v2497_v19 }
 0x1b8   :  { %1777 = vmatpush2.bf16.msra.mxu0 %v2303_v1  ;;  %v2531_v1 = vld [vmem:[#allocation8 + $0x3e0] ss:$8 sps:$4 sm:$0xff]  }
 0x1b9   :  { %1778 = vmatprep.subr.bf16.mxu0 %v2302_v2  ;;  %1528 = vmatpush2.bf16.msra.mxu1 %v2495_v20  ;;  %v2536_v2 = vld [vmem:[#allocation8 + $0x3d4] ss:$8 sps:$4 sm:$0xff]   ;;  %v2551_v20 = vld [vmem:[#allocation8 + $0x384] ss:$8 sps:$4 sm:$0xff]  }
 0x1ba   :  { %1529 = vmatprep.subr.bf16.mxu1 %v2500_v21 }
 0x1bc   :  { %1779 = vmatpush2.bf16.msra.mxu0 %v2301_v7  ;;  %v2540_v7 = vld [vmem:[#allocation8 + $0x3b0] ss:$8 sps:$4 sm:$0xff]  }
 0x1bd   :  { %1780 = vmatprep.subr.bf16.mxu0 %v2300_v8  ;;  %1530 = vmatpush2.bf16.msra.mxu1 %v2498_v22  ;;  %v2545_v8 = vld [vmem:[#allocation8 + $0x3a4] ss:$8 sps:$4 sm:$0xff]  }
 0x1be   :  { %1531 = vmatprep.subr.bf16.mxu1 %v2503_v23 }
 0x1c0   :  { %1781 = vmatpush2.bf16.msra.mxu0 %v2299_v13  ;;  %v1589_v13 = vrot.slane %v1580_v10, %v2726_v17 }
 0x1c1   :  { %1782 = vmatprep.subr.bf16.mxu0 %v2298_v14  ;;  %1532 = vmatpush2.bf16.msra.mxu1 %v2501_v24  ;;  %v1585_v14 = vrot.slane %v1580_v10, %v2724_v16 }
 0x1c2   :  { %1993 = vmatprep.subr.bf16.mxu1 %v2506_v25 }
 0x1c4   :  { %1783 = vmatpush2.bf16.msra.mxu0 %v2297_v18  ;;  %v2546_v18 = vld [vmem:[#allocation8 + $0x390] ss:$8 sps:$4 sm:$0xff]  }
 0x1c7   :  { %1785 = vmatmul.mubr.bf16.vlgmr.msra.gmra.mxu0 %v2720_v9 }
 0x207   :  { %v2736_v26 = vpop.f32.mrf.mxu0 }
 0x209   :  { %v2738_v27 = vpop.f32.mrf.mxu0 }
 0x20b   :  { %v2740_v28 = vpop.f32.mrf.mxu0 }
 0x20d   :  { %v2742_v9 = vpop.f32.mrf.mxu0 }
 0x247   :  { %v1294_v30 = vpop.f32.mrf.mxu0 }
 0x248   :  { %v1295_v37 = vadd.f32 %v1294_v30, %v1093_v32 }
 0x249   :  { %v1296_v33 = vpop.f32.mrf.mxu0 }
 0x24a   :  { %v1297_v35 = vadd.f32 %v1296_v33, %v1097_v31  ;;  %v1303_v43 = vmax.f32 %v1295_v37, 0.0 }
 0x24b   :  { %v1298_v34 = vpop.f32.mrf.mxu0 }
 0x24c   :  { %v1299_v36 = vadd.f32 %v1298_v34, %v1093_v32  ;;  %v1304_v41 = vmax.f32 %v1297_v35, 0.0 }
 0x24d   :  { %v1300_v38 = vpop.f32.mrf.mxu0 }
 0x24e   :  { %v1301_v39 = vadd.f32 %v1300_v38, %v1097_v31  ;;  %v1305_v40 = vmax.f32 %v1299_v36, 0.0  ;;  %v1047_v36 = vpop.f32.mrf.mxu1 }
 0x250   :  { %v1306_v42 = vmax.f32 %v1301_v39, 0.0  ;;  %v1307_v46 = vpack.c.bf16 %v1305_v40, %v1303_v43  ;;  %v1049_v37 = vpop.f32.mrf.mxu1  ;;  %v1048_v43 = vadd.f32 %v1047_v36, %v2736_v26 }
 0x252   :  { %v1308_v44 = vpack.c.bf16 %v1306_v42, %v1304_v41  ;;  %v1051_v38 = vpop.f32.mrf.mxu1 }
 0x254   :  { %1533 = vmatprep.mubr.bf16.mxu1 %v1308_v44  ;;  %v1053_v39 = vpop.f32.mrf.mxu1 }
 0x255   :  { %1534 = vmatmul.mubr.bf16.vlgmr.msra.gmra.mxu1 %v1307_v46  ;;  %v1050_v46 = vadd.f32 %v1049_v37, %v2738_v27  ;;  %v1054_v26 = vadd.f32 %v1053_v39, %v2742_v9 }
 0x256   :  { %1994 = vmatpush1.bf16.msra.mxu1 %v2504_v45  ;;  %v2040_v45 = vld [vmem:[%s2767_s4] sm:$0x3]  ;;  %s2670_s4 = smov [#allocation10]  }
 0x257   :  { %1995 = vmatprep.subr.bf16.mxu1 %v2509_v47  ;;  %s2075_s17 = sshll.u32 %s2670_s4, 4  ;;  %s2076_s17 = int_to_ptr.vmem [resolvable:$true] %s2075_s17 }
 0x258   :  { %s2632_s18 = scalar_lea.vmem %s2076_s17, 256  ;;  %p2637_p7 = scmp.lt.s32.totalorder %s2076_s17, %s2076_s17 }
 0x259   :  { %p2633_p6 = scmp.ne.s32.totalorder %s2076_s17, %s2632_s18  ;;  %p2638_p8 = scmp.lt.s32.totalorder %s2632_s18, %s2632_s18 }
 0x25a   :  { %1996 = vmatpush1.bf16.msra.mxu1 %v2507_v48  ;;  %v1052_v48 = vadd.f32 %v1051_v38, %v2740_v28 }
 0x25b   :  { %1997 = vmatprep.subr.bf16.mxu1 %v2512_v49  ;;  %p2639_p9 = por %p2638_p8, %p2637_p7 }
 0x25d   :  { %p2640_p10 = pnand %p2639_p9, %p2633_p6 }
 0x25e   :  { %1998 = vmatpush1.bf16.msra.mxu1 %v2510_v50 }
 0x25f   :  { %1999 = vmatprep.subr.bf16.mxu1 %v2515_v51 }
 0x262   :  { %2000 = vmatpush1.bf16.msra.mxu1 %v2513_v52  ;;  %v2045_v52 = vrot.slane %v2040_v45, %v2724_v16 }
 0x263   :  { %2001 = vmatprep.subr.bf16.mxu1 %v2518_v53  ;;  %v2049_v53 = vrot.slane %v2040_v45, %v2726_v17 }
 0x266   :  { %2002 = vmatpush1.bf16.msra.mxu1 %v2516_v54 }
 0x267   :  { %2003 = vmatprep.subr.bf16.mxu1 %v2521_v55 }
 0x26a   :  { %2004 = vmatpush1.bf16.msra.mxu1 %v2519_v56 }
 0x26b   :  { %2005 = vmatprep.subr.bf16.mxu1 %v2524_v57 }
 0x26e   :  { %2006 = vmatpush1.bf16.msra.mxu1 %v2522_v59 }
 0x26f   :  { %2007 = vmatprep.subr.bf16.mxu1 %v2527_v60 }
 0x272   :  { %2008 = vmatpush1.bf16.msra.mxu1 %v2525_v61 }
 0x273   :  { %2009 = vmatprep.subr.bf16.mxu1 %v2530_v62 }
 0x276   :  { %2010 = vmatpush2.bf16.msra.mxu1 %v2528_v63 }
 0x277   :  { %2011 = vmatprep.subr.bf16.mxu1 %v2533_v0 }
 0x27a   :  { %2012 = vmatpush2.bf16.msra.mxu1 %v2531_v1 }
 0x27b   :  { %2013 = vmatprep.subr.bf16.mxu1 %v2536_v2 }
 0x27e   :  { %2014 = vmatpush2.bf16.msra.mxu1 %v2534_v3 }
 0x27f   :  { %2015 = vmatprep.subr.bf16.mxu1 %v2539_v4 }
 0x282   :  { %2016 = vmatpush2.bf16.msra.mxu1 %v2537_v5 }
 0x283   :  { %2017 = vmatprep.subr.bf16.mxu1 %v2542_v6 }
 0x286   :  { %2018 = vmatpush2.bf16.msra.mxu1 %v2540_v7 }
 0x287   :  { %v1786_v11 = vpop.f32.mrf.mxu0  ;;  %2019 = vmatprep.subr.bf16.mxu1 %v2545_v8 }
 0x288   :  { %v1787_v23 = vadd.f32 %v1786_v11, %v1585_v14 }
 0x289   :  { %v1788_v15 = vpop.f32.mrf.mxu0 }
 0x28a   :  { %2020 = vmatpush2.bf16.msra.mxu1 %v2543_v58  ;;  %v1789_v21 = vadd.f32 %v1788_v15, %v1589_v13  ;;  %v1795_v33 = vmax.f32 %v1787_v23, 0.0 }
 0x28b   :  { %v1790_v19 = vpop.f32.mrf.mxu0  ;;  %2021 = vmatprep.subr.bf16.mxu1 %v2548_v12 }
 0x28c   :  { %v1791_v22 = vadd.f32 %v1790_v19, %v1585_v14  ;;  %v1796_v31 = vmax.f32 %v1789_v21, 0.0 }
 0x28d   :  { %v1792_v24 = vpop.f32.mrf.mxu0 }
 0x28e   :  { %v1793_v25 = vadd.f32 %v1792_v24, %v1589_v13  ;;  %2022 = vmatpush2.bf16.msra.mxu1 %v2546_v18  ;;  %v1797_v30 = vmax.f32 %v1791_v22, 0.0 }
 0x28f   :  { %2023 = vmatprep.subr.bf16.mxu1 %v2551_v20 }
 0x290   :  { %v1798_v32 = vmax.f32 %v1793_v25, 0.0  ;;  %v1799_v35 = vpack.c.bf16 %v1797_v30, %v1795_v33 }
 0x292   :  { %v1800_v34 = vpack.c.bf16 %v1798_v32, %v1796_v31  ;;  %2024 = vmatpush2.bf16.msra.mxu1 %v2549_v29 }
 0x294   :  { %2025 = vmatprep.mubr.bf16.mxu1 %v1800_v34 }
 0x295   :  { %2026 = vmatmul.mubr.bf16.vlgmr.msra.gmra.mxu1 %v1799_v35 }
 0x315   :  { %v1535_v40 = vpop.f32.mrf.mxu1 }
 0x316   :  { %v1544_v47 = vadd.f32 %v1535_v40, %v1048_v43 }
 0x317   :  { %v1537_v41 = vpop.f32.mrf.mxu1 }
 0x318   :  { %v1545_v50 = vadd.f32 %v1537_v41, %v1050_v46 }
 0x319   :  { %v1539_v42 = vpop.f32.mrf.mxu1 }
 0x31a   :  { %v1546_v55 = vadd.f32 %v1539_v42, %v1052_v48 }
 0x31b   :  { %v1541_v44 = vpop.f32.mrf.mxu1 }
 0x31c   :  { %v1547_v59 = vadd.f32 %v1541_v44, %v1054_v26 }
 0x355   :  { %v2027_v49 = vpop.f32.mrf.mxu1 }
 0x356   :  { %v2036_v51 = vadd.f32 %v2027_v49, %v1544_v47 }
 0x357   :  { %v2029_v54 = vpop.f32.mrf.mxu1 }
 0x358   :  { %v2037_v56 = vadd.f32 %v2029_v54, %v1545_v50  ;;  %v2052_v60 = vadd.f32 %v2045_v52, %v2036_v51 }
 0x359   :  { %v2031_v57 = vpop.f32.mrf.mxu1 }
 0x35a   :  { %v2053_v61 = vadd.f32 %v2049_v53, %v2037_v56  ;;  %v2038_v27 = vadd.f32 %v2031_v57, %v1546_v55 }
 0x35b   :  { %v2033_v62 = vpop.f32.mrf.mxu1 }
 0x35c   :  { %v2347_v63 = vpack.c.bf16 %v2053_v61, %v2052_v60  ;;  %v2039_v28 = vadd.f32 %v2033_v62, %v1547_v59  ;;  %v2054_v0 = vadd.f32 %v2045_v52, %v2038_v27 }
 0x35e   :  { %2068 = vst [vmem:[#allocation10] sm:$0xff] %v2347_v63  ;;  %v2055_v16 = vadd.f32 %v2049_v53, %v2039_v28 }
 0x360   :  { %v2348_v1 = vpack.c.bf16 %v2055_v16, %v2054_v0 }
 0x362   :  { %2069 = vst [vmem:[#allocation10 + $0x8] sm:$0xff] %v2348_v1 }
 0x363   :  { %2643 = shalt.err (!%p2640_p10)
}
 0x364   :  { %2081 = dma.vmem_to_hbm [thread:$0]  %s2076_s17, 256, %s2768_s5, [#allocation4], %s2668_s0, %s2668_s0, %s2669_s14  }
 0x365   :  { %2658 = dma.done.wait [#allocation4], 256  }
 0x366   :  { %2659 = vsyncadd [#allocation4], 4294967040 }
 0x367   :  { %2085 = vsyncpa [#allocation3], 1 }
 0x368   :  { %2086 = vsyncpa [#allocation6], 1 }
 0x369   :  { %2087 = vsyncpa [#allocation9], 1 }
 0x36a   :  { %2088 = vsyncpa [#allocation4], 1 }

</bundles_post_ra>
